<compile_context>
chip_gen: v7x
topology: tpu7x:2x2x1
jax: 0.10.0
libtpu: 0.0.40
codegen_flags: <defaults>
</compile_context>

<pallas_src>
import jax
import jax.numpy as jnp
from jax import lax
from jax.experimental import pallas as pl
from jax.experimental.pallas import tpu as pltpu

# ----- small, module-consistent sizes -----
B  = 2      # batch
N  = 128    # points in the partial cloud
H1 = 64     # backbone hidden 1
H2 = 128    # backbone global feature size
HD = 32     # implicit-function hidden width
M  = 512    # decoder query points

# Flat fast-weight slab layout (per batch = one lane-dense row of the hyper-head output).
OFF_W0 = 0          # 96  : w0   (3, HD), row-major
OFF_S0 = 96         # 32  : s0
OFF_B0 = 128        # 32  : b0
OFF_S1 = 160        # 32  : s1
OFF_B1 = 192        # 32  : b1
OFF_W2 = 224        # 32  : w2^T
OFF_S2 = 256        # 1   : s2 scalar
OFF_B2 = 288        # 1   : b2 scalar
OFF_W1 = 512        # 1024: w1   (HD, HD), row-major
F_PAD  = 1536       # 12 * 128 -> lane-dense, unmasked head-output stores


def pcr_kernel(x_ref, qt_ref, w1_ref, b1_ref, w2_ref, b2_ref, wh_ref, bh_ref,
               o_ref, slab_ref):
    f32, bf16 = jnp.float32, jnp.bfloat16

    # ---------------- backbone: shared pointwise MLP + per-batch max-pool ----------------
    x = x_ref[...].astype(bf16)                                                # (B*N, 3)
    h = jnp.dot(x, w1_ref[...].astype(bf16), preferred_element_type=f32) + b1_ref[...]
    h = jnp.maximum(h, 0.0)
    h = jnp.dot(h.astype(bf16), w2_ref[...].astype(bf16),
                preferred_element_type=f32) + b2_ref[...]
    h = jnp.maximum(h, 0.0)                                                    # (B*N, H2)
    g = jnp.max(h.reshape(B, N, H2), axis=1)                                   # (B, H2)

    # hyper-head: ONE batched matmul -> flat fast-weight slab kept in VMEM scratch
    slab_ref[...] = jnp.dot(g.astype(bf16), wh_ref[...],
                            preferred_element_type=f32) + bh_ref[...]          # (B, F_PAD)

    # ---------------- implicit-function decoder (activations (HD, M), lane-dense) --------
    qt = qt_ref[...].astype(bf16)                                              # (3, M)
    eye = (lax.broadcasted_iota(jnp.int32, (HD, HD), 0) ==
           lax.broadcasted_iota(jnp.int32, (HD, HD), 1)).astype(f32)

    def lanes_to_sublanes(mat):
        # (rows, HD) -> (HD, rows): move the hidden dim from lanes into sublanes with one
        # tiny MXU matmul (minor-minor contraction; no vector transposes needed).
        return lax.dot_general(eye, mat, (((1,), (1,)), ((), ())),
                               preferred_element_type=f32)

    for b in range(B):   # B=2 unrolled inside the single grid step
        def srow(lo, size):
            return slab_ref[b:b + 1, lo:lo + size]                             # (1, size)

        fs0, fb0 = srow(OFF_S0, HD), srow(OFF_B0, HD)
        fs1, fb1 = srow(OFF_S1, HD), srow(OFF_B1, HD)
        fw2      = srow(OFF_W2, HD)                                            # (1, HD) == w2^T
        fs2, fb2 = srow(OFF_S2, 1), srow(OFF_B2, 1)                            # (1, 1) scalars
        fw0 = jnp.concatenate([srow(OFF_W0 + HD * r, HD) for r in range(3)],
                              axis=0)                                          # (3, HD)
        fw1 = jnp.concatenate([srow(OFF_W1 + HD * k, HD) for k in range(HD)],
                              axis=0)                                          # (HD, HD)

        # layer 0: x = relu((q @ w0) * s0 + b0), scale folded into the weight, bias as a column
        t0 = lanes_to_sublanes(jnp.concatenate([fw0 * fs0, fb0], axis=0))      # (HD, 4)
        h1 = jnp.dot(t0[:, 0:3].astype(bf16), qt,
                     preferred_element_type=f32) + t0[:, 3:4]                  # (HD, M)
        h1 = jnp.maximum(h1, 0.0)

        # layer 1: x = relu((x @ w1) * s1 + b1)
        t1 = lanes_to_sublanes(jnp.concatenate([fw1 * fs1, fb1], axis=0))      # (HD, HD+1)
        h2 = jnp.dot(t1[:, 0:HD].astype(bf16), h1.astype(bf16),
                     preferred_element_type=f32) + t1[:, HD:HD + 1]            # (HD, M)
        h2 = jnp.maximum(h2, 0.0)

        # final layer + sigmoid: (1, HD) @ (HD, M) -> lane-dense (1, M) probability row
        logits = jnp.dot(fw2.astype(bf16), h2.astype(bf16),
                         preferred_element_type=f32)                           # (1, M)
        o_ref[b:b + 1, :] = jax.nn.sigmoid(logits * fs2 + fb2)


def pcr_forward(partial_pc, queries, params):
    w1, b1, w2, b2, wh, bh = params
    x_flat = partial_pc.reshape(B * N, 3)
    qt = jnp.transpose(queries)                       # (3, M): lane-dense query layout

    probs = pl.pallas_call(
        pcr_kernel,
        out_shape=jax.ShapeDtypeStruct((B, M), jnp.float32),
        grid_spec=pltpu.PrefetchScalarGridSpec(
            num_scalar_prefetch=0,
            grid=(1,),
            in_specs=[
                pl.BlockSpec((B * N, 3),  lambda i: (0, 0)),
                pl.BlockSpec((3, M),      lambda i: (0, 0)),
                pl.BlockSpec((3, H1),     lambda i: (0, 0)),
                pl.BlockSpec((1, H1),     lambda i: (0, 0)),
                pl.BlockSpec((H1, H2),    lambda i: (0, 0)),
                pl.BlockSpec((1, H2),     lambda i: (0, 0)),
                pl.BlockSpec((H2, F_PAD), lambda i: (0, 0)),
                pl.BlockSpec((1, F_PAD),  lambda i: (0, 0)),
            ],
            out_specs=pl.BlockSpec((B, M), lambda i: (0, 0)),
            scratch_shapes=[pltpu.VMEM((B, F_PAD), jnp.float32)],   # fast-weight slab, never HBM
        ),
        compiler_params=pltpu.CompilerParams(dimension_semantics=("arbitrary",)),
    )(x_flat, qt, w1, b1, w2, b2, wh, bh)

    reconstruction = jnp.broadcast_to(queries[None], (B, M, 3))      # sampled grid per batch
    # TODO(synk): the PyTorch Decoder keeps only points with probability > threshold;
    # that produces a data-dependent shape, so all sampled points + probs are returned.
    return reconstruction, probs


# ---------------------------------------------------------------------------
# Deterministic parameter init (synthetic; no checkpoint loading)
# ---------------------------------------------------------------------------
def init_params(key):
    ks = jax.random.split(key, 4)
    scale = 0.1
    w1 = jax.random.normal(ks[0], (3, H1), jnp.float32) * scale
    b1 = jnp.zeros((1, H1), jnp.float32)
    w2 = jax.random.normal(ks[1], (H1, H2), jnp.float32) * scale
    b2 = jnp.zeros((1, H2), jnp.float32)
    # hyper head: general linear map H2 -> fast-weight slab; bf16 halves its DMA.
    wh = (jax.random.normal(ks[2], (H2, F_PAD), jnp.float32) * scale).astype(jnp.bfloat16)
    bh = jax.random.normal(ks[3], (1, F_PAD), jnp.float32) * scale
    return (w1, b1, w2, b2, wh, bh)


if __name__ == "__main__":
    key = jax.random.PRNGKey(0)
    k_pc, k_q, k_p = jax.random.split(key, 3)
    partial_pc = jax.random.uniform(k_pc, (B, N, 3), jnp.float32, -0.5, 0.5)
    queries = jax.random.uniform(k_q, (M, 3), jnp.float32, -0.5, 0.5)
    params = init_params(k_p)

    fwd = jax.jit(lambda pc, q: pcr_forward(pc, q, params))
    reconstruction, probabilities = fwd(partial_pc, queries)
    jax.block_until_ready((reconstruction, probabilities))

    assert reconstruction.shape == (B, M, 3)
    assert probabilities.shape == (B, M)
    assert bool(jnp.all((probabilities >= 0.0) & (probabilities <= 1.0)))
    print("KERNEL_OK")
</pallas_src>

<mosaic_0001>
module attributes {stable_mosaic.version = 11 : i64} {
  func.func @pcr_kernel(%arg0: i32, %arg1: memref<256x3xf32, #tpu.memory_space<vmem>>, %arg2: memref<3x512xf32, #tpu.memory_space<vmem>>, %arg3: memref<3x64xf32, #tpu.memory_space<vmem>>, %arg4: memref<1x64xf32, #tpu.memory_space<vmem>>, %arg5: memref<64x128xf32, #tpu.memory_space<vmem>>, %arg6: memref<1x128xf32, #tpu.memory_space<vmem>>, %arg7: memref<128x1536xbf16, #tpu.memory_space<vmem>>, %arg8: memref<1x1536xf32, #tpu.memory_space<vmem>>, %arg9: memref<2x512xf32, #tpu.memory_space<vmem>>, %arg10: memref<2x1536xf32, #tpu.memory_space<vmem>>) attributes {dimension_semantics = [#tpu.dimension_semantics<arbitrary>], iteration_bounds = array<i64: 1>, scalar_prefetch = 0 : i64, scratch_operands = 1 : i64, tpu.core_type = #tpu.core_type<tc>, window_params = [{pipeline_mode = #tpu.pipeline_mode<synchronous>, transform_indices = @transform_0, window_bounds = array<i64: 256, 3>}, {pipeline_mode = #tpu.pipeline_mode<synchronous>, transform_indices = @transform_1, window_bounds = array<i64: 3, 512>}, {pipeline_mode = #tpu.pipeline_mode<synchronous>, transform_indices = @transform_2, window_bounds = array<i64: 3, 64>}, {pipeline_mode = #tpu.pipeline_mode<synchronous>, transform_indices = @transform_3, window_bounds = array<i64: 1, 64>}, {pipeline_mode = #tpu.pipeline_mode<synchronous>, transform_indices = @transform_4, window_bounds = array<i64: 64, 128>}, {pipeline_mode = #tpu.pipeline_mode<synchronous>, transform_indices = @transform_5, window_bounds = array<i64: 1, 128>}, {pipeline_mode = #tpu.pipeline_mode<synchronous>, transform_indices = @transform_6, window_bounds = array<i64: 128, 1536>}, {pipeline_mode = #tpu.pipeline_mode<synchronous>, transform_indices = @transform_7, window_bounds = array<i64: 1, 1536>}, {pipeline_mode = #tpu.pipeline_mode<synchronous>, transform_indices = @transform_8, window_bounds = array<i64: 2, 512>}]} {
    %c0 = arith.constant 0 : index
    %c0_0 = arith.constant 0 : index
    %0 = vector.load %arg1[%c0, %c0_0] : memref<256x3xf32, #tpu.memory_space<vmem>>, vector<256x3xf32>
    %1 = arith.truncf %0 : vector<256x3xf32> to vector<256x3xbf16>
    %c0_1 = arith.constant 0 : index
    %c0_2 = arith.constant 0 : index
    %2 = vector.load %arg3[%c0_1, %c0_2] : memref<3x64xf32, #tpu.memory_space<vmem>>, vector<3x64xf32>
    %3 = arith.truncf %2 : vector<3x64xf32> to vector<3x64xbf16>
    %cst = arith.constant dense<0.000000e+00> : vector<256x64xf32>
    %4 = tpu.matmul %1, %3, %cst {dimension_numbers = #tpu.dot_dimension_numbers<[1], [0], [0], [1], [0, 0, 1, 1], [], []>} : vector<256x3xbf16>, vector<3x64xbf16>, vector<256x64xf32> -> vector<256x64xf32>
    %c0_3 = arith.constant 0 : index
    %c0_4 = arith.constant 0 : index
    %5 = vector.load %arg4[%c0_3, %c0_4] : memref<1x64xf32, #tpu.memory_space<vmem>>, vector<1x64xf32>
    %6 = vector.broadcast %5 : vector<1x64xf32> to vector<256x64xf32>
    %7 = arith.addf %4, %6 : vector<256x64xf32>
    %cst_5 = arith.constant 0.000000e+00 : f32
    %8 = vector.broadcast %cst_5 : f32 to vector<256x64xf32>
    %9 = arith.maximumf %7, %8 : vector<256x64xf32>
    %10 = arith.truncf %9 : vector<256x64xf32> to vector<256x64xbf16>
    %c0_6 = arith.constant 0 : index
    %c0_7 = arith.constant 0 : index
    %11 = vector.load %arg5[%c0_6, %c0_7] : memref<64x128xf32, #tpu.memory_space<vmem>>, vector<64x128xf32>
    %12 = arith.truncf %11 : vector<64x128xf32> to vector<64x128xbf16>
    %cst_8 = arith.constant dense<0.000000e+00> : vector<256x128xf32>
    %13 = tpu.matmul %10, %12, %cst_8 {dimension_numbers = #tpu.dot_dimension_numbers<[1], [0], [0], [1], [0, 0, 1, 1], [], []>} : vector<256x64xbf16>, vector<64x128xbf16>, vector<256x128xf32> -> vector<256x128xf32>
    %c0_9 = arith.constant 0 : index
    %c0_10 = arith.constant 0 : index
    %14 = vector.load %arg6[%c0_9, %c0_10] : memref<1x128xf32, #tpu.memory_space<vmem>>, vector<1x128xf32>
    %15 = vector.broadcast %14 : vector<1x128xf32> to vector<256x128xf32>
    %16 = arith.addf %13, %15 : vector<256x128xf32>
    %cst_11 = arith.constant 0.000000e+00 : f32
    %17 = vector.broadcast %cst_11 : f32 to vector<256x128xf32>
    %18 = arith.maximumf %16, %17 : vector<256x128xf32>
    %19 = vector.shape_cast %18 : vector<256x128xf32> to vector<2x128x128xf32>
    %cst_12 = arith.constant dense<0xFF800000> : vector<2x128xf32>
    %20 = vector.multi_reduction <maximumf>, %19, %cst_12 [1] : vector<2x128x128xf32> to vector<2x128xf32>
    %21 = arith.truncf %20 : vector<2x128xf32> to vector<2x128xbf16>
    %c0_13 = arith.constant 0 : index
    %c0_14 = arith.constant 0 : index
    %22 = vector.load %arg7[%c0_13, %c0_14] : memref<128x1536xbf16, #tpu.memory_space<vmem>>, vector<128x1536xbf16>
    %cst_15 = arith.constant dense<0.000000e+00> : vector<2x1536xf32>
    %23 = tpu.matmul %21, %22, %cst_15 {dimension_numbers = #tpu.dot_dimension_numbers<[1], [0], [0], [1], [0, 0, 1, 1], [], []>} : vector<2x128xbf16>, vector<128x1536xbf16>, vector<2x1536xf32> -> vector<2x1536xf32>
    %c0_16 = arith.constant 0 : index
    %c0_17 = arith.constant 0 : index
    %24 = vector.load %arg8[%c0_16, %c0_17] : memref<1x1536xf32, #tpu.memory_space<vmem>>, vector<1x1536xf32>
    %25 = vector.broadcast %24 : vector<1x1536xf32> to vector<2x1536xf32>
    %26 = arith.addf %23, %25 : vector<2x1536xf32>
    %c0_18 = arith.constant 0 : index
    %c0_19 = arith.constant 0 : index
    %27 = vector.load %arg10[%c0_18, %c0_19] : memref<2x1536xf32, #tpu.memory_space<vmem>>, vector<2x1536xf32>
    tpu.vector_store %arg10[%c0_18, %c0_19], %26 {strides = array<i32>} : memref<2x1536xf32, #tpu.memory_space<vmem>>, vector<2x1536xf32>,
    %c0_20 = arith.constant 0 : index
    %c0_21 = arith.constant 0 : index
    %28 = vector.load %arg2[%c0_20, %c0_21] : memref<3x512xf32, #tpu.memory_space<vmem>>, vector<3x512xf32>
    %29 = arith.truncf %28 : vector<3x512xf32> to vector<3x512xbf16>
    %30 = tpu.iota {dimensions = array<i32: 0>} : vector<32x32xi32>
    %31 = tpu.iota {dimensions = array<i32: 1>} : vector<32x32xi32>
    %32 = arith.cmpi eq, %30, %31 : vector<32x32xi32>
    %33 = arith.extui %32 : vector<32x32xi1> to vector<32x32xi32>
    %34 = arith.sitofp %33 : vector<32x32xi32> to vector<32x32xf32>
    %c0_22 = arith.constant 0 : index
    %c96 = arith.constant 96 : index
    %35 = vector.load %arg10[%c0_22, %c96] : memref<2x1536xf32, #tpu.memory_space<vmem>>, vector<1x32xf32>
    %c0_23 = arith.constant 0 : index
    %c128 = arith.constant 128 : index
    %36 = vector.load %arg10[%c0_23, %c128] : memref<2x1536xf32, #tpu.memory_space<vmem>>, vector<1x32xf32>
    %c0_24 = arith.constant 0 : index
    %c160 = arith.constant 160 : index
    %37 = vector.load %arg10[%c0_24, %c160] : memref<2x1536xf32, #tpu.memory_space<vmem>>, vector<1x32xf32>
    %c0_25 = arith.constant 0 : index
    %c192 = arith.constant 192 : index
    %38 = vector.load %arg10[%c0_25, %c192] : memref<2x1536xf32, #tpu.memory_space<vmem>>, vector<1x32xf32>
    %c0_26 = arith.constant 0 : index
    %c224 = arith.constant 224 : index
    %39 = vector.load %arg10[%c0_26, %c224] : memref<2x1536xf32, #tpu.memory_space<vmem>>, vector<1x32xf32>
    %c0_27 = arith.constant 0 : index
    %c256 = arith.constant 256 : index
    %40 = vector.load %arg10[%c0_27, %c256] : memref<2x1536xf32, #tpu.memory_space<vmem>>, vector<1x1xf32>
    %c0_28 = arith.constant 0 : index
    %c288 = arith.constant 288 : index
    %41 = vector.load %arg10[%c0_28, %c288] : memref<2x1536xf32, #tpu.memory_space<vmem>>, vector<1x1xf32>
    %c0_29 = arith.constant 0 : index
    %c0_30 = arith.constant 0 : index
    %42 = vector.load %arg10[%c0_29, %c0_30] : memref<2x1536xf32, #tpu.memory_space<vmem>>, vector<1x32xf32>
    %c0_31 = arith.constant 0 : index
    %c32 = arith.constant 32 : index
    %43 = vector.load %arg10[%c0_31, %c32] : memref<2x1536xf32, #tpu.memory_space<vmem>>, vector<1x32xf32>
    %c0_32 = arith.constant 0 : index
    %c64 = arith.constant 64 : index
    %44 = vector.load %arg10[%c0_32, %c64] : memref<2x1536xf32, #tpu.memory_space<vmem>>, vector<1x32xf32>
    %45 = tpu.concatenate %42, %43, %44 in 0 : vector<1x32xf32>, vector<1x32xf32>, vector<1x32xf32> -> vector<3x32xf32>
    %c0_33 = arith.constant 0 : index
    %c512 = arith.constant 512 : index
    %46 = vector.load %arg10[%c0_33, %c512] : memref<2x1536xf32, #tpu.memory_space<vmem>>, vector<1x32xf32>
    %c0_34 = arith.constant 0 : index
    %c544 = arith.constant 544 : index
    %47 = vector.load %arg10[%c0_34, %c544] : memref<2x1536xf32, #tpu.memory_space<vmem>>, vector<1x32xf32>
    %c0_35 = arith.constant 0 : index
    %c576 = arith.constant 576 : index
    %48 = vector.load %arg10[%c0_35, %c576] : memref<2x1536xf32, #tpu.memory_space<vmem>>, vector<1x32xf32>
    %c0_36 = arith.constant 0 : index
    %c608 = arith.constant 608 : index
    %49 = vector.load %arg10[%c0_36, %c608] : memref<2x1536xf32, #tpu.memory_space<vmem>>, vector<1x32xf32>
    %c0_37 = arith.constant 0 : index
    %c640 = arith.constant 640 : index
    %50 = vector.load %arg10[%c0_37, %c640] : memref<2x1536xf32, #tpu.memory_space<vmem>>, vector<1x32xf32>
    %c0_38 = arith.constant 0 : index
    %c672 = arith.constant 672 : index
    %51 = vector.load %arg10[%c0_38, %c672] : memref<2x1536xf32, #tpu.memory_space<vmem>>, vector<1x32xf32>
    %c0_39 = arith.constant 0 : index
    %c704 = arith.constant 704 : index
    %52 = vector.load %arg10[%c0_39, %c704] : memref<2x1536xf32, #tpu.memory_space<vmem>>, vector<1x32xf32>
    %c0_40 = arith.constant 0 : index
    %c736 = arith.constant 736 : index
    %53 = vector.load %arg10[%c0_40, %c736] : memref<2x1536xf32, #tpu.memory_space<vmem>>, vector<1x32xf32>
    %c0_41 = arith.constant 0 : index
    %c768 = arith.constant 768 : index
    %54 = vector.load %arg10[%c0_41, %c768] : memref<2x1536xf32, #tpu.memory_space<vmem>>, vector<1x32xf32>
    %c0_42 = arith.constant 0 : index
    %c800 = arith.constant 800 : index
    %55 = vector.load %arg10[%c0_42, %c800] : memref<2x1536xf32, #tpu.memory_space<vmem>>, vector<1x32xf32>
    %c0_43 = arith.constant 0 : index
    %c832 = arith.constant 832 : index
    %56 = vector.load %arg10[%c0_43, %c832] : memref<2x1536xf32, #tpu.memory_space<vmem>>, vector<1x32xf32>
    %c0_44 = arith.constant 0 : index
    %c864 = arith.constant 864 : index
    %57 = vector.load %arg10[%c0_44, %c864] : memref<2x1536xf32, #tpu.memory_space<vmem>>, vector<1x32xf32>
    %c0_45 = arith.constant 0 : index
    %c896 = arith.constant 896 : index
    %58 = vector.load %arg10[%c0_45, %c896] : memref<2x1536xf32, #tpu.memory_space<vmem>>, vector<1x32xf32>
    %c0_46 = arith.constant 0 : index
    %c928 = arith.constant 928 : index
    %59 = vector.load %arg10[%c0_46, %c928] : memref<2x1536xf32, #tpu.memory_space<vmem>>, vector<1x32xf32>
    %c0_47 = arith.constant 0 : index
    %c960 = arith.constant 960 : index
    %60 = vector.load %arg10[%c0_47, %c960] : memref<2x1536xf32, #tpu.memory_space<vmem>>, vector<1x32xf32>
    %c0_48 = arith.constant 0 : index
    %c992 = arith.constant 992 : index
    %61 = vector.load %arg10[%c0_48, %c992] : memref<2x1536xf32, #tpu.memory_space<vmem>>, vector<1x32xf32>
    %c0_49 = arith.constant 0 : index
    %c1024 = arith.constant 1024 : index
    %62 = vector.load %arg10[%c0_49, %c1024] : memref<2x1536xf32, #tpu.memory_space<vmem>>, vector<1x32xf32>
    %c0_50 = arith.constant 0 : index
    %c1056 = arith.constant 1056 : index
    %63 = vector.load %arg10[%c0_50, %c1056] : memref<2x1536xf32, #tpu.memory_space<vmem>>, vector<1x32xf32>
    %c0_51 = arith.constant 0 : index
    %c1088 = arith.constant 1088 : index
    %64 = vector.load %arg10[%c0_51, %c1088] : memref<2x1536xf32, #tpu.memory_space<vmem>>, vector<1x32xf32>
    %c0_52 = arith.constant 0 : index
    %c1120 = arith.constant 1120 : index
    %65 = vector.load %arg10[%c0_52, %c1120] : memref<2x1536xf32, #tpu.memory_space<vmem>>, vector<1x32xf32>
    %c0_53 = arith.constant 0 : index
    %c1152 = arith.constant 1152 : index
    %66 = vector.load %arg10[%c0_53, %c1152] : memref<2x1536xf32, #tpu.memory_space<vmem>>, vector<1x32xf32>
    %c0_54 = arith.constant 0 : index
    %c1184 = arith.constant 1184 : index
    %67 = vector.load %arg10[%c0_54, %c1184] : memref<2x1536xf32, #tpu.memory_space<vmem>>, vector<1x32xf32>
    %c0_55 = arith.constant 0 : index
    %c1216 = arith.constant 1216 : index
    %68 = vector.load %arg10[%c0_55, %c1216] : memref<2x1536xf32, #tpu.memory_space<vmem>>, vector<1x32xf32>
    %c0_56 = arith.constant 0 : index
    %c1248 = arith.constant 1248 : index
    %69 = vector.load %arg10[%c0_56, %c1248] : memref<2x1536xf32, #tpu.memory_space<vmem>>, vector<1x32xf32>
    %c0_57 = arith.constant 0 : index
    %c1280 = arith.constant 1280 : index
    %70 = vector.load %arg10[%c0_57, %c1280] : memref<2x1536xf32, #tpu.memory_space<vmem>>, vector<1x32xf32>
    %c0_58 = arith.constant 0 : index
    %c1312 = arith.constant 1312 : index
    %71 = vector.load %arg10[%c0_58, %c1312] : memref<2x1536xf32, #tpu.memory_space<vmem>>, vector<1x32xf32>
    %c0_59 = arith.constant 0 : index
    %c1344 = arith.constant 1344 : index
    %72 = vector.load %arg10[%c0_59, %c1344] : memref<2x1536xf32, #tpu.memory_space<vmem>>, vector<1x32xf32>
    %c0_60 = arith.constant 0 : index
    %c1376 = arith.constant 1376 : index
    %73 = vector.load %arg10[%c0_60, %c1376] : memref<2x1536xf32, #tpu.memory_space<vmem>>, vector<1x32xf32>
    %c0_61 = arith.constant 0 : index
    %c1408 = arith.constant 1408 : index
    %74 = vector.load %arg10[%c0_61, %c1408] : memref<2x1536xf32, #tpu.memory_space<vmem>>, vector<1x32xf32>
    %c0_62 = arith.constant 0 : index
    %c1440 = arith.constant 1440 : index
    %75 = vector.load %arg10[%c0_62, %c1440] : memref<2x1536xf32, #tpu.memory_space<vmem>>, vector<1x32xf32>
    %c0_63 = arith.constant 0 : index
    %c1472 = arith.constant 1472 : index
    %76 = vector.load %arg10[%c0_63, %c1472] : memref<2x1536xf32, #tpu.memory_space<vmem>>, vector<1x32xf32>
    %c0_64 = arith.constant 0 : index
    %c1504 = arith.constant 1504 : index
    %77 = vector.load %arg10[%c0_64, %c1504] : memref<2x1536xf32, #tpu.memory_space<vmem>>, vector<1x32xf32>
    %78 = tpu.concatenate %46, %47, %48, %49, %50, %51, %52, %53, %54, %55, %56, %57, %58, %59, %60, %61 in 0 : vector<1x32xf32>, vector<1x32xf32>, vector<1x32xf32>, vector<1x32xf32>, vector<1x32xf32>, vector<1x32xf32>, vector<1x32xf32>, vector<1x32xf32>, vector<1x32xf32>, vector<1x32xf32>, vector<1x32xf32>, vector<1x32xf32>, vector<1x32xf32>, vector<1x32xf32>, vector<1x32xf32>, vector<1x32xf32> -> vector<16x32xf32>
    %79 = tpu.concatenate %62, %63, %64, %65, %66, %67, %68, %69, %70, %71, %72, %73, %74, %75, %76, %77 in 0 : vector<1x32xf32>, vector<1x32xf32>, vector<1x32xf32>, vector<1x32xf32>, vector<1x32xf32>, vector<1x32xf32>, vector<1x32xf32>, vector<1x32xf32>, vector<1x32xf32>, vector<1x32xf32>, vector<1x32xf32>, vector<1x32xf32>, vector<1x32xf32>, vector<1x32xf32>, vector<1x32xf32>, vector<1x32xf32> -> vector<16x32xf32>
    %80 = tpu.concatenate %78, %79 in 0 : vector<16x32xf32>, vector<16x32xf32> -> vector<32x32xf32>
    %81 = vector.broadcast %35 : vector<1x32xf32> to vector<3x32xf32>
    %82 = arith.mulf %45, %81 : vector<3x32xf32>
    %83 = tpu.concatenate %82, %36 in 0 : vector<3x32xf32>, vector<1x32xf32> -> vector<4x32xf32>
    %cst_65 = arith.constant dense<0.000000e+00> : vector<32x4xf32>
    %84 = tpu.matmul %34, %83, %cst_65 {dimension_numbers = #tpu.dot_dimension_numbers<[1], [1], [0], [0], [0, 0, 1, 0], [], []>} : vector<32x32xf32>, vector<4x32xf32>, vector<32x4xf32> -> vector<32x4xf32>
    %85 = vector.extract_strided_slice %84 {offsets = [0, 0], sizes = [32, 3], strides = [1, 1]} : vector<32x4xf32> to vector<32x3xf32>
    %86 = arith.truncf %85 : vector<32x3xf32> to vector<32x3xbf16>
    %cst_66 = arith.constant dense<0.000000e+00> : vector<32x512xf32>
    %87 = tpu.matmul %86, %29, %cst_66 {dimension_numbers = #tpu.dot_dimension_numbers<[1], [0], [0], [1], [0, 0, 1, 1], [], []>} : vector<32x3xbf16>, vector<3x512xbf16>, vector<32x512xf32> -> vector<32x512xf32>
    %88 = vector.extract_strided_slice %84 {offsets = [0, 3], sizes = [32, 1], strides = [1, 1]} : vector<32x4xf32> to vector<32x1xf32>
    %89 = vector.broadcast %88 : vector<32x1xf32> to vector<32x512xf32>
    %90 = arith.addf %87, %89 : vector<32x512xf32>
    %cst_67 = arith.constant 0.000000e+00 : f32
    %91 = vector.broadcast %cst_67 : f32 to vector<32x512xf32>
    %92 = arith.maximumf %90, %91 : vector<32x512xf32>
    %93 = vector.broadcast %37 : vector<1x32xf32> to vector<32x32xf32>
    %94 = arith.mulf %80, %93 : vector<32x32xf32>
    %95 = tpu.concatenate %94, %38 in 0 : vector<32x32xf32>, vector<1x32xf32> -> vector<33x32xf32>
    %cst_68 = arith.constant dense<0.000000e+00> : vector<32x33xf32>
    %96 = tpu.matmul %34, %95, %cst_68 {dimension_numbers = #tpu.dot_dimension_numbers<[1], [1], [0], [0], [0, 0, 1, 0], [], []>} : vector<32x32xf32>, vector<33x32xf32>, vector<32x33xf32> -> vector<32x33xf32>
    %97 = vector.extract_strided_slice %96 {offsets = [0, 0], sizes = [32, 32], strides = [1, 1]} : vector<32x33xf32> to vector<32x32xf32>
    %98 = arith.truncf %97 : vector<32x32xf32> to vector<32x32xbf16>
    %99 = arith.truncf %92 : vector<32x512xf32> to vector<32x512xbf16>
    %cst_69 = arith.constant dense<0.000000e+00> : vector<32x512xf32>
    %100 = tpu.matmul %98, %99, %cst_69 {dimension_numbers = #tpu.dot_dimension_numbers<[1], [0], [0], [1], [0, 0, 1, 1], [], []>} : vector<32x32xbf16>, vector<32x512xbf16>, vector<32x512xf32> -> vector<32x512xf32>
    %101 = vector.extract_strided_slice %96 {offsets = [0, 32], sizes = [32, 1], strides = [1, 1]} : vector<32x33xf32> to vector<32x1xf32>
    %102 = vector.broadcast %101 : vector<32x1xf32> to vector<32x512xf32>
    %103 = arith.addf %100, %102 : vector<32x512xf32>
    %cst_70 = arith.constant 0.000000e+00 : f32
    %104 = vector.broadcast %cst_70 : f32 to vector<32x512xf32>
    %105 = arith.maximumf %103, %104 : vector<32x512xf32>
    %106 = arith.truncf %39 : vector<1x32xf32> to vector<1x32xbf16>
    %107 = arith.truncf %105 : vector<32x512xf32> to vector<32x512xbf16>
    %cst_71 = arith.constant dense<0.000000e+00> : vector<1x512xf32>
    %108 = tpu.matmul %106, %107, %cst_71 {dimension_numbers = #tpu.dot_dimension_numbers<[1], [0], [0], [1], [0, 0, 1, 1], [], []>} : vector<1x32xbf16>, vector<32x512xbf16>, vector<1x512xf32> -> vector<1x512xf32>
    %109 = vector.broadcast %40 : vector<1x1xf32> to vector<1x512xf32>
    %110 = arith.mulf %108, %109 : vector<1x512xf32>
    %111 = vector.broadcast %41 : vector<1x1xf32> to vector<1x512xf32>
    %112 = arith.addf %110, %111 : vector<1x512xf32>
    %113 = arith.negf %112 : vector<1x512xf32>
    %114 = math.exp %113 : vector<1x512xf32>
    %cst_72 = arith.constant 1.000000e+00 : f32
    %115 = vector.broadcast %cst_72 : f32 to vector<1x512xf32>
    %116 = arith.addf %115, %114 : vector<1x512xf32>
    %117 = arith.divf %115, %116 : vector<1x512xf32>
    %c0_73 = arith.constant 0 : index
    %c0_74 = arith.constant 0 : index
    %118 = vector.load %arg9[%c0_73, %c0_74] : memref<2x512xf32, #tpu.memory_space<vmem>>, vector<1x512xf32>
    tpu.vector_store %arg9[%c0_73, %c0_74], %117 {strides = array<i32>} : memref<2x512xf32, #tpu.memory_space<vmem>>, vector<1x512xf32>,
    %c1 = arith.constant 1 : index
    %c96_75 = arith.constant 96 : index
    %119 = vector.load %arg10[%c1, %c96_75] : memref<2x1536xf32, #tpu.memory_space<vmem>>, vector<1x32xf32>
    %c1_76 = arith.constant 1 : index
    %c128_77 = arith.constant 128 : index
    %120 = vector.load %arg10[%c1_76, %c128_77] : memref<2x1536xf32, #tpu.memory_space<vmem>>, vector<1x32xf32>
    %c1_78 = arith.constant 1 : index
    %c160_79 = arith.constant 160 : index
    %121 = vector.load %arg10[%c1_78, %c160_79] : memref<2x1536xf32, #tpu.memory_space<vmem>>, vector<1x32xf32>
    %c1_80 = arith.constant 1 : index
    %c192_81 = arith.constant 192 : index
    %122 = vector.load %arg10[%c1_80, %c192_81] : memref<2x1536xf32, #tpu.memory_space<vmem>>, vector<1x32xf32>
    %c1_82 = arith.constant 1 : index
    %c224_83 = arith.constant 224 : index
    %123 = vector.load %arg10[%c1_82, %c224_83] : memref<2x1536xf32, #tpu.memory_space<vmem>>, vector<1x32xf32>
    %c1_84 = arith.constant 1 : index
    %c256_85 = arith.constant 256 : index
    %124 = vector.load %arg10[%c1_84, %c256_85] : memref<2x1536xf32, #tpu.memory_space<vmem>>, vector<1x1xf32>
    %c1_86 = arith.constant 1 : index
    %c288_87 = arith.constant 288 : index
    %125 = vector.load %arg10[%c1_86, %c288_87] : memref<2x1536xf32, #tpu.memory_space<vmem>>, vector<1x1xf32>
    %c1_88 = arith.constant 1 : index
    %c0_89 = arith.constant 0 : index
    %126 = vector.load %arg10[%c1_88, %c0_89] : memref<2x1536xf32, #tpu.memory_space<vmem>>, vector<1x32xf32>
    %c1_90 = arith.constant 1 : index
    %c32_91 = arith.constant 32 : index
    %127 = vector.load %arg10[%c1_90, %c32_91] : memref<2x1536xf32, #tpu.memory_space<vmem>>, vector<1x32xf32>
    %c1_92 = arith.constant 1 : index
    %c64_93 = arith.constant 64 : index
    %128 = vector.load %arg10[%c1_92, %c64_93] : memref<2x1536xf32, #tpu.memory_space<vmem>>, vector<1x32xf32>
    %129 = tpu.concatenate %126, %127, %128 in 0 : vector<1x32xf32>, vector<1x32xf32>, vector<1x32xf32> -> vector<3x32xf32>
    %c1_94 = arith.constant 1 : index
    %c512_95 = arith.constant 512 : index
    %130 = vector.load %arg10[%c1_94, %c512_95] : memref<2x1536xf32, #tpu.memory_space<vmem>>, vector<1x32xf32>
    %c1_96 = arith.constant 1 : index
    %c544_97 = arith.constant 544 : index
    %131 = vector.load %arg10[%c1_96, %c544_97] : memref<2x1536xf32, #tpu.memory_space<vmem>>, vector<1x32xf32>
    %c1_98 = arith.constant 1 : index
    %c576_99 = arith.constant 576 : index
    %132 = vector.load %arg10[%c1_98, %c576_99] : memref<2x1536xf32, #tpu.memory_space<vmem>>, vector<1x32xf32>
    %c1_100 = arith.constant 1 : index
    %c608_101 = arith.constant 608 : index
    %133 = vector.load %arg10[%c1_100, %c608_101] : memref<2x1536xf32, #tpu.memory_space<vmem>>, vector<1x32xf32>
    %c1_102 = arith.constant 1 : index
    %c640_103 = arith.constant 640 : index
    %134 = vector.load %arg10[%c1_102, %c640_103] : memref<2x1536xf32, #tpu.memory_space<vmem>>, vector<1x32xf32>
    %c1_104 = arith.constant 1 : index
    %c672_105 = arith.constant 672 : index
    %135 = vector.load %arg10[%c1_104, %c672_105] : memref<2x1536xf32, #tpu.memory_space<vmem>>, vector<1x32xf32>
    %c1_106 = arith.constant 1 : index
    %c704_107 = arith.constant 704 : index
    %136 = vector.load %arg10[%c1_106, %c704_107] : memref<2x1536xf32, #tpu.memory_space<vmem>>, vector<1x32xf32>
    %c1_108 = arith.constant 1 : index
    %c736_109 = arith.constant 736 : index
    %137 = vector.load %arg10[%c1_108, %c736_109] : memref<2x1536xf32, #tpu.memory_space<vmem>>, vector<1x32xf32>
    %c1_110 = arith.constant 1 : index
    %c768_111 = arith.constant 768 : index
    %138 = vector.load %arg10[%c1_110, %c768_111] : memref<2x1536xf32, #tpu.memory_space<vmem>>, vector<1x32xf32>
    %c1_112 = arith.constant 1 : index
    %c800_113 = arith.constant 800 : index
    %139 = vector.load %arg10[%c1_112, %c800_113] : memref<2x1536xf32, #tpu.memory_space<vmem>>, vector<1x32xf32>
    %c1_114 = arith.constant 1 : index
    %c832_115 = arith.constant 832 : index
    %140 = vector.load %arg10[%c1_114, %c832_115] : memref<2x1536xf32, #tpu.memory_space<vmem>>, vector<1x32xf32>
    %c1_116 = arith.constant 1 : index
    %c864_117 = arith.constant 864 : index
    %141 = vector.load %arg10[%c1_116, %c864_117] : memref<2x1536xf32, #tpu.memory_space<vmem>>, vector<1x32xf32>
    %c1_118 = arith.constant 1 : index
    %c896_119 = arith.constant 896 : index
    %142 = vector.load %arg10[%c1_118, %c896_119] : memref<2x1536xf32, #tpu.memory_space<vmem>>, vector<1x32xf32>
    %c1_120 = arith.constant 1 : index
    %c928_121 = arith.constant 928 : index
    %143 = vector.load %arg10[%c1_120, %c928_121] : memref<2x1536xf32, #tpu.memory_space<vmem>>, vector<1x32xf32>
    %c1_122 = arith.constant 1 : index
    %c960_123 = arith.constant 960 : index
    %144 = vector.load %arg10[%c1_122, %c960_123] : memref<2x1536xf32, #tpu.memory_space<vmem>>, vector<1x32xf32>
    %c1_124 = arith.constant 1 : index
    %c992_125 = arith.constant 992 : index
    %145 = vector.load %arg10[%c1_124, %c992_125] : memref<2x1536xf32, #tpu.memory_space<vmem>>, vector<1x32xf32>
    %c1_126 = arith.constant 1 : index
    %c1024_127 = arith.constant 1024 : index
    %146 = vector.load %arg10[%c1_126, %c1024_127] : memref<2x1536xf32, #tpu.memory_space<vmem>>, vector<1x32xf32>
    %c1_128 = arith.constant 1 : index
    %c1056_129 = arith.constant 1056 : index
    %147 = vector.load %arg10[%c1_128, %c1056_129] : memref<2x1536xf32, #tpu.memory_space<vmem>>, vector<1x32xf32>
    %c1_130 = arith.constant 1 : index
    %c1088_131 = arith.constant 1088 : index
    %148 = vector.load %arg10[%c1_130, %c1088_131] : memref<2x1536xf32, #tpu.memory_space<vmem>>, vector<1x32xf32>
    %c1_132 = arith.constant 1 : index
    %c1120_133 = arith.constant 1120 : index
    %149 = vector.load %arg10[%c1_132, %c1120_133] : memref<2x1536xf32, #tpu.memory_space<vmem>>, vector<1x32xf32>
    %c1_134 = arith.constant 1 : index
    %c1152_135 = arith.constant 1152 : index
    %150 = vector.load %arg10[%c1_134, %c1152_135] : memref<2x1536xf32, #tpu.memory_space<vmem>>, vector<1x32xf32>
    %c1_136 = arith.constant 1 : index
    %c1184_137 = arith.constant 1184 : index
    %151 = vector.load %arg10[%c1_136, %c1184_137] : memref<2x1536xf32, #tpu.memory_space<vmem>>, vector<1x32xf32>
    %c1_138 = arith.constant 1 : index
    %c1216_139 = arith.constant 1216 : index
    %152 = vector.load %arg10[%c1_138, %c1216_139] : memref<2x1536xf32, #tpu.memory_space<vmem>>, vector<1x32xf32>
    %c1_140 = arith.constant 1 : index
    %c1248_141 = arith.constant 1248 : index
    %153 = vector.load %arg10[%c1_140, %c1248_141] : memref<2x1536xf32, #tpu.memory_space<vmem>>, vector<1x32xf32>
    %c1_142 = arith.constant 1 : index
    %c1280_143 = arith.constant 1280 : index
    %154 = vector.load %arg10[%c1_142, %c1280_143] : memref<2x1536xf32, #tpu.memory_space<vmem>>, vector<1x32xf32>
    %c1_144 = arith.constant 1 : index
    %c1312_145 = arith.constant 1312 : index
    %155 = vector.load %arg10[%c1_144, %c1312_145] : memref<2x1536xf32, #tpu.memory_space<vmem>>, vector<1x32xf32>
    %c1_146 = arith.constant 1 : index
    %c1344_147 = arith.constant 1344 : index
    %156 = vector.load %arg10[%c1_146, %c1344_147] : memref<2x1536xf32, #tpu.memory_space<vmem>>, vector<1x32xf32>
    %c1_148 = arith.constant 1 : index
    %c1376_149 = arith.constant 1376 : index
    %157 = vector.load %arg10[%c1_148, %c1376_149] : memref<2x1536xf32, #tpu.memory_space<vmem>>, vector<1x32xf32>
    %c1_150 = arith.constant 1 : index
    %c1408_151 = arith.constant 1408 : index
    %158 = vector.load %arg10[%c1_150, %c1408_151] : memref<2x1536xf32, #tpu.memory_space<vmem>>, vector<1x32xf32>
    %c1_152 = arith.constant 1 : index
    %c1440_153 = arith.constant 1440 : index
    %159 = vector.load %arg10[%c1_152, %c1440_153] : memref<2x1536xf32, #tpu.memory_space<vmem>>, vector<1x32xf32>
    %c1_154 = arith.constant 1 : index
    %c1472_155 = arith.constant 1472 : index
    %160 = vector.load %arg10[%c1_154, %c1472_155] : memref<2x1536xf32, #tpu.memory_space<vmem>>, vector<1x32xf32>
    %c1_156 = arith.constant 1 : index
    %c1504_157 = arith.constant 1504 : index
    %161 = vector.load %arg10[%c1_156, %c1504_157] : memref<2x1536xf32, #tpu.memory_space<vmem>>, vector<1x32xf32>
    %162 = tpu.concatenate %130, %131, %132, %133, %134, %135, %136, %137, %138, %139, %140, %141, %142, %143, %144, %145 in 0 : vector<1x32xf32>, vector<1x32xf32>, vector<1x32xf32>, vector<1x32xf32>, vector<1x32xf32>, vector<1x32xf32>, vector<1x32xf32>, vector<1x32xf32>, vector<1x32xf32>, vector<1x32xf32>, vector<1x32xf32>, vector<1x32xf32>, vector<1x32xf32>, vector<1x32xf32>, vector<1x32xf32>, vector<1x32xf32> -> vector<16x32xf32>
    %163 = tpu.concatenate %146, %147, %148, %149, %150, %151, %152, %153, %154, %155, %156, %157, %158, %159, %160, %161 in 0 : vector<1x32xf32>, vector<1x32xf32>, vector<1x32xf32>, vector<1x32xf32>, vector<1x32xf32>, vector<1x32xf32>, vector<1x32xf32>, vector<1x32xf32>, vector<1x32xf32>, vector<1x32xf32>, vector<1x32xf32>, vector<1x32xf32>, vector<1x32xf32>, vector<1x32xf32>, vector<1x32xf32>, vector<1x32xf32> -> vector<16x32xf32>
    %164 = tpu.concatenate %162, %163 in 0 : vector<16x32xf32>, vector<16x32xf32> -> vector<32x32xf32>
    %165 = vector.broadcast %119 : vector<1x32xf32> to vector<3x32xf32>
    %166 = arith.mulf %129, %165 : vector<3x32xf32>
    %167 = tpu.concatenate %166, %120 in 0 : vector<3x32xf32>, vector<1x32xf32> -> vector<4x32xf32>
    %cst_158 = arith.constant dense<0.000000e+00> : vector<32x4xf32>
    %168 = tpu.matmul %34, %167, %cst_158 {dimension_numbers = #tpu.dot_dimension_numbers<[1], [1], [0], [0], [0, 0, 1, 0], [], []>} : vector<32x32xf32>, vector<4x32xf32>, vector<32x4xf32> -> vector<32x4xf32>
    %169 = vector.extract_strided_slice %168 {offsets = [0, 0], sizes = [32, 3], strides = [1, 1]} : vector<32x4xf32> to vector<32x3xf32>
    %170 = arith.truncf %169 : vector<32x3xf32> to vector<32x3xbf16>
    %cst_159 = arith.constant dense<0.000000e+00> : vector<32x512xf32>
    %171 = tpu.matmul %170, %29, %cst_159 {dimension_numbers = #tpu.dot_dimension_numbers<[1], [0], [0], [1], [0, 0, 1, 1], [], []>} : vector<32x3xbf16>, vector<3x512xbf16>, vector<32x512xf32> -> vector<32x512xf32>
    %172 = vector.extract_strided_slice %168 {offsets = [0, 3], sizes = [32, 1], strides = [1, 1]} : vector<32x4xf32> to vector<32x1xf32>
    %173 = vector.broadcast %172 : vector<32x1xf32> to vector<32x512xf32>
    %174 = arith.addf %171, %173 : vector<32x512xf32>
    %cst_160 = arith.constant 0.000000e+00 : f32
    %175 = vector.broadcast %cst_160 : f32 to vector<32x512xf32>
    %176 = arith.maximumf %174, %175 : vector<32x512xf32>
    %177 = vector.broadcast %121 : vector<1x32xf32> to vector<32x32xf32>
    %178 = arith.mulf %164, %177 : vector<32x32xf32>
    %179 = tpu.concatenate %178, %122 in 0 : vector<32x32xf32>, vector<1x32xf32> -> vector<33x32xf32>
    %cst_161 = arith.constant dense<0.000000e+00> : vector<32x33xf32>
    %180 = tpu.matmul %34, %179, %cst_161 {dimension_numbers = #tpu.dot_dimension_numbers<[1], [1], [0], [0], [0, 0, 1, 0], [], []>} : vector<32x32xf32>, vector<33x32xf32>, vector<32x33xf32> -> vector<32x33xf32>
    %181 = vector.extract_strided_slice %180 {offsets = [0, 0], sizes = [32, 32], strides = [1, 1]} : vector<32x33xf32> to vector<32x32xf32>
    %182 = arith.truncf %181 : vector<32x32xf32> to vector<32x32xbf16>
    %183 = arith.truncf %176 : vector<32x512xf32> to vector<32x512xbf16>
    %cst_162 = arith.constant dense<0.000000e+00> : vector<32x512xf32>
    %184 = tpu.matmul %182, %183, %cst_162 {dimension_numbers = #tpu.dot_dimension_numbers<[1], [0], [0], [1], [0, 0, 1, 1], [], []>} : vector<32x32xbf16>, vector<32x512xbf16>, vector<32x512xf32> -> vector<32x512xf32>
    %185 = vector.extract_strided_slice %180 {offsets = [0, 32], sizes = [32, 1], strides = [1, 1]} : vector<32x33xf32> to vector<32x1xf32>
    %186 = vector.broadcast %185 : vector<32x1xf32> to vector<32x512xf32>
    %187 = arith.addf %184, %186 : vector<32x512xf32>
    %cst_163 = arith.constant 0.000000e+00 : f32
    %188 = vector.broadcast %cst_163 : f32 to vector<32x512xf32>
    %189 = arith.maximumf %187, %188 : vector<32x512xf32>
    %190 = arith.truncf %123 : vector<1x32xf32> to vector<1x32xbf16>
    %191 = arith.truncf %189 : vector<32x512xf32> to vector<32x512xbf16>
    %cst_164 = arith.constant dense<0.000000e+00> : vector<1x512xf32>
    %192 = tpu.matmul %190, %191, %cst_164 {dimension_numbers = #tpu.dot_dimension_numbers<[1], [0], [0], [1], [0, 0, 1, 1], [], []>} : vector<1x32xbf16>, vector<32x512xbf16>, vector<1x512xf32> -> vector<1x512xf32>
    %193 = vector.broadcast %124 : vector<1x1xf32> to vector<1x512xf32>
    %194 = arith.mulf %192, %193 : vector<1x512xf32>
    %195 = vector.broadcast %125 : vector<1x1xf32> to vector<1x512xf32>
    %196 = arith.addf %194, %195 : vector<1x512xf32>
    %197 = arith.negf %196 : vector<1x512xf32>
    %198 = math.exp %197 : vector<1x512xf32>
    %cst_165 = arith.constant 1.000000e+00 : f32
    %199 = vector.broadcast %cst_165 : f32 to vector<1x512xf32>
    %200 = arith.addf %199, %198 : vector<1x512xf32>
    %201 = arith.divf %199, %200 : vector<1x512xf32>
    %c1_166 = arith.constant 1 : index
    %c0_167 = arith.constant 0 : index
    %202 = vector.load %arg9[%c1_166, %c0_167] : memref<2x512xf32, #tpu.memory_space<vmem>>, vector<1x512xf32>
    tpu.vector_store %arg9[%c1_166, %c0_167], %201 {strides = array<i32>} : memref<2x512xf32, #tpu.memory_space<vmem>>, vector<1x512xf32>,
    return
  }
  func.func @transform_0(%arg0: i32) -> (i32, i32) {
    %c0_i32 = arith.constant 0 : i32
    %c0_i32_0 = arith.constant 0 : i32
    %c0_i32_1 = arith.constant 0 : i32
    return %c0_i32, %c0_i32_0 : i32, i32
  }
  func.func @transform_1(%arg0: i32) -> (i32, i32) {
    %c0_i32 = arith.constant 0 : i32
    %c0_i32_0 = arith.constant 0 : i32
    %c0_i32_1 = arith.constant 0 : i32
    return %c0_i32, %c0_i32_0 : i32, i32
  }
  func.func @transform_2(%arg0: i32) -> (i32, i32) {
    %c0_i32 = arith.constant 0 : i32
    %c0_i32_0 = arith.constant 0 : i32
    %c0_i32_1 = arith.constant 0 : i32
    return %c0_i32, %c0_i32_0 : i32, i32
  }
  func.func @transform_3(%arg0: i32) -> (i32, i32) {
    %c0_i32 = arith.constant 0 : i32
    %c0_i32_0 = arith.constant 0 : i32
    %c0_i32_1 = arith.constant 0 : i32
    return %c0_i32, %c0_i32_0 : i32, i32
  }
  func.func @transform_4(%arg0: i32) -> (i32, i32) {
    %c0_i32 = arith.constant 0 : i32
    %c0_i32_0 = arith.constant 0 : i32
    %c0_i32_1 = arith.constant 0 : i32
    return %c0_i32, %c0_i32_0 : i32, i32
  }
  func.func @transform_5(%arg0: i32) -> (i32, i32) {
    %c0_i32 = arith.constant 0 : i32
    %c0_i32_0 = arith.constant 0 : i32
    %c0_i32_1 = arith.constant 0 : i32
    return %c0_i32, %c0_i32_0 : i32, i32
  }
  func.func @transform_6(%arg0: i32) -> (i32, i32) {
    %c0_i32 = arith.constant 0 : i32
    %c0_i32_0 = arith.constant 0 : i32
    %c0_i32_1 = arith.constant 0 : i32
    return %c0_i32, %c0_i32_0 : i32, i32
  }
  func.func @transform_7(%arg0: i32) -> (i32, i32) {
    %c0_i32 = arith.constant 0 : i32
    %c0_i32_0 = arith.constant 0 : i32
    %c0_i32_1 = arith.constant 0 : i32
    return %c0_i32, %c0_i32_0 : i32, i32
  }
  func.func @transform_8(%arg0: i32) -> (i32, i32) {
    %c0_i32 = arith.constant 0 : i32
    %c0_i32_0 = arith.constant 0 : i32
    %c0_i32_1 = arith.constant 0 : i32
    return %c0_i32, %c0_i32_0 : i32, i32
  }
}

</mosaic_0001>

<bundles_post_ra>
// kernel: _lambda_.1
= control target key start
LH: loop header
LB: loop body
LE: loop exit
PB: predicated region body
PF: predicated region fallthrough
CT: control target
= control target key end

     0   :  { %vm137_vm0 = vcmask 1040384   ;;  %vm138_vm1 = vcmask 1041408   ;;  %v4110_v3 = vmov 65535   ;;  %vm88_vm2 = vcmask 23552   ;;  %s5258_s0 = inlined_call_operand.vmem [shape: f32[256,3], index: 0, kind: input, shape index: {}]   ;;  %s5259_s1 = inlined_call_operand.vmem [shape: f32[3,512], index: 1, kind: input, shape index: {}]   ;;  %s5260_s2 = inlined_call_operand.vmem [shape: f32[3,64], index: 2, kind: input, shape index: {}]   ;;  %s5261_s3 = inlined_call_operand.vmem [shape: f32[1,64], index: 3, kind: input, shape index: {}]   ;;  %s5262_s4 = inlined_call_operand.vmem [shape: f32[64,128], index: 4, kind: input, shape index: {}]   ;;  %s5263_s5 = inlined_call_operand.vmem [shape: f32[1,128], index: 5, kind: input, shape index: {}]   ;;  %s5264_s6 = inlined_call_operand.vmem [shape: bf16[128,1536], index: 6, kind: input, shape index: {}]   ;;  %s5265_s7 = inlined_call_operand.vmem [shape: f32[1,1536], index: 7, kind: input, shape index: {}]   ;;  %s5266_s8 = inlined_call_operand.hbm [shape: f32[2,512], index: 8, kind: output, shape index: {}]  }
   0x1   :  { %v79_v0 = vld [vmem:[%s5260_s2] sm:$0x7]  ;;  %v139_v4 = vsel %vm137_vm0, 4294967295, %v4110_v3  ;;  %v32_v5 = vld [vmem:[%s5258_s0 + $0x8] sm:$0xff]  ;;  %v33_v8 = vld [vmem:[%s5258_s0 + $0x10] sm:$0xff] }
   0x2   :  { %v31_v1 = vld [vmem:[%s5258_s0] sm:$0xff]  ;;  %v80_v2 = vpack.c.bf16 %v79_v0, %v79_v0  ;;  %v4178_v6 = vsel %vm138_vm1, %v139_v4, 0  ;;  %v34_v9 = vld [vmem:[%s5258_s0 + $0x18] sm:$0xff]  ;;  %v36_v12 = vld [vmem:[%s5258_s0 + $0x28] sm:$0xff] }
   0x3   :  { %v63_v7 = vpack.c.bf16 %v32_v5, %v31_v1  ;;  %v35_v11 = vld [vmem:[%s5258_s0 + $0x20] sm:$0xff]  ;;  %v64_v13 = vpack.c.bf16 %v34_v9, %v33_v8  ;;  %v37_v15 = vld [vmem:[%s5258_s0 + $0x30] sm:$0xff]  ;;  %v38_v16 = vld [vmem:[%s5258_s0 + $0x38] sm:$0xff] }
   0x4   :  { %v142_v10 = vand.u32 %v4178_v6, %v80_v2  ;;  %v65_v14 = vpack.c.bf16 %v36_v12, %v35_v11  ;;  %v39_v17 = vld [vmem:[%s5258_s0 + $0x40] sm:$0xff]  ;;  %v40_v18 = vld [vmem:[%s5258_s0 + $0x48] sm:$0xff]  ;;  %v355_v22 = vld [vmem:[%s5262_s4 + $0x10] sm:$0xff]  ;;  %v66_v24 = vpack.c.bf16 %v38_v16, %v37_v15 }
   0x5   :  { %3740 = vmatprep.mubr.msk.bf16.mxu0 %vm88_vm2, %v63_v7  ;;  %v353_v19 = vld [vmem:[%s5262_s4] sm:$0xff]  ;;  %v354_v20 = vld [vmem:[%s5262_s4 + $0x8] sm:$0xff]  ;;  %v356_v23 = vld [vmem:[%s5262_s4 + $0x18] sm:$0xff]  ;;  %v67_v26 = vpack.c.bf16 %v40_v18, %v39_v17 }
   0x6   :  { %3738 = vmatprep.subr.bf16.mxu0 %v142_v10  ;;  %v361_v21 = vpack.c.bf16 %v354_v20, %v353_v19  ;;  %v362_v25 = vpack.c.bf16 %v356_v23, %v355_v22  ;;  %v41_v27 = vld [vmem:[%s5258_s0 + $0x50] sm:$0xff]  ;;  %v42_v28 = vld [vmem:[%s5258_s0 + $0x58] sm:$0xff]  ;;  %v43_v29 = vld [vmem:[%s5258_s0 + $0x60] sm:$0xff] }
   0x7   :  { %3739 = vmatpush3.bf16.msra.mxu0 %v142_v10  ;;  %v44_v30 = vld [vmem:[%s5258_s0 + $0x68] sm:$0xff]  ;;  %v68_v31 = vpack.c.bf16 %v42_v28, %v41_v27  ;;  %v45_v33 = vld [vmem:[%s5258_s0 + $0x70] sm:$0xff]  ;;  %v46_v34 = vld [vmem:[%s5258_s0 + $0x78] sm:$0xff] }
   0x8   :  { %3772 = vmatprep.subr.bf16.mxu1 %v361_v21  ;;  %v69_v32 = vpack.c.bf16 %v44_v30, %v43_v29  ;;  %v47_v35 = vld [vmem:[%s5258_s0 + $0x80] sm:$0xff]  ;;  %v48_v36 = vld [vmem:[%s5258_s0 + $0x88] sm:$0xff]  ;;  %v70_v37 = vpack.c.bf16 %v46_v34, %v45_v33  ;;  %v49_v39 = vld [vmem:[%s5258_s0 + $0x90] sm:$0xff] }
   0x9   :  { %3773 = vmatpush3.bf16.msra.mxu1 %v361_v21  ;;  %v71_v38 = vpack.c.bf16 %v48_v36, %v47_v35  ;;  %v50_v40 = vld [vmem:[%s5258_s0 + $0x98] sm:$0xff]  ;;  %v51_v41 = vld [vmem:[%s5258_s0 + $0xa0] sm:$0xff]  ;;  %v52_v42 = vld [vmem:[%s5258_s0 + $0xa8] sm:$0xff] }
   0xa   :  { %3741 = vmatmul.mubr.msk.bf16.vlgmr.msra.gmra.mrb[0].mxu0 %vm88_vm2, %v64_v13  ;;  %3774 = vmatprep.subr.bf16.mxu1 %v362_v25  ;;  %v72_v43 = vpack.c.bf16 %v50_v40, %v49_v39  ;;  %v73_v44 = vpack.c.bf16 %v52_v42, %v51_v41  ;;  %v53_v45 = vld [vmem:[%s5258_s0 + $0xb0] sm:$0xff]  ;;  %v54_v46 = vld [vmem:[%s5258_s0 + $0xb8] sm:$0xff]  ;;  %v55_v47 = vld [vmem:[%s5258_s0 + $0xc0] sm:$0xff] }
   0xb   :  { %3744 = vmatprep.mubr.msk.bf16.mxu0 %vm88_vm2, %v65_v14  ;;  %v56_v48 = vld [vmem:[%s5258_s0 + $0xc8] sm:$0xff] }
   0xd   :  { %3775 = vmatpush3.bf16.msra.mxu1 %v362_v25 }
  0x12   :  { %3745 = vmatmul.mubr.msk.bf16.gmra.mrb[4].mxu0 %vm88_vm2, %v66_v24 }
  0x13   :  { %3748 = vmatprep.mubr.msk.bf16.mxu0 %vm88_vm2, %v67_v26 }
  0x1a   :  { %3749 = vmatmul.mubr.msk.bf16.gmra.mrb[8].mxu0 %vm88_vm2, %v68_v31 }
  0x1b   :  { %3752 = vmatprep.mubr.msk.bf16.mxu0 %vm88_vm2, %v69_v32 }
  0x22   :  { %3753 = vmatmul.mubr.msk.bf16.gmra.mrb[12].mxu0 %vm88_vm2, %v70_v37 }
  0x23   :  { %3756 = vmatprep.mubr.msk.bf16.mxu0 %vm88_vm2, %v71_v38 }
  0x2a   :  { %3757 = vmatmul.mubr.msk.bf16.gmra.mrb[16].mxu0 %vm88_vm2, %v72_v43 }
  0x2b   :  { %3760 = vmatprep.mubr.msk.bf16.mxu0 %vm88_vm2, %v73_v44 }
  0x2c   :  { %13 = vsyncpa [#allocation4], 0  ;;  %v74_v49 = vpack.c.bf16 %v54_v46, %v53_v45  ;;  %v75_v50 = vpack.c.bf16 %v56_v48, %v55_v47  ;;  %v57_v51 = vld [vmem:[%s5258_s0 + $0xd0] sm:$0xff]  ;;  %v58_v52 = vld [vmem:[%s5258_s0 + $0xd8] sm:$0xff]  ;;  %vm372_vm3 = vcmask 523264   ;;  %vm822_vm4 = vcmask 1041409  }
  0x2d   :  { %v59_v53 = vld [vmem:[%s5258_s0 + $0xe0] sm:$0xff]  ;;  %v60_v54 = vld [vmem:[%s5258_s0 + $0xe8] sm:$0xff]  ;;  %v76_v55 = vpack.c.bf16 %v58_v52, %v57_v51  ;;  %v61_v57 = vld [vmem:[%s5258_s0 + $0xf0] sm:$0xff]  ;;  %s4114_s24 = smov 32   ;;  %s4115_s25 = smov 96   ;;  %vm1841_vm7 = vcmask 261120  }
  0x2e   :  { %v77_v56 = vpack.c.bf16 %v60_v54, %v59_v53  ;;  %v62_v58 = vld [vmem:[%s5258_s0 + $0xf8] sm:$0xff]  ;;  %v357_v60 = vld [vmem:[%s5262_s4 + $0x20] sm:$0xff]  ;;  %v358_v61 = vld [vmem:[%s5262_s4 + $0x28] sm:$0xff]  ;;  %s4116_s26 = smov 64   ;;  %vm1736_vm10 = vcmask 1042432   ;;  %vm1738_vm11 = vcmask 1043456  }
  0x2f   :  { %v78_v59 = vpack.c.bf16 %v62_v58, %v61_v57  ;;  %v363_v62 = vpack.c.bf16 %v358_v61, %v357_v60  ;;  %v359_v63 = vld [vmem:[%s5262_s4 + $0x30] sm:$0xff]  ;;  %v360_v0 = vld [vmem:[%s5262_s4 + $0x38] sm:$0xff]  ;;  %v4314_v2 = vld [vmem:[%s5261_s3] ss:$0 sm:$0xff]  ;;  %vm1740_vm12 = vcmask 1044480   ;;  %vm1742_vm13 = vcmask 1045504  }
  0x30   :  { %v364_v1 = vpack.c.bf16 %v360_v0, %v359_v63  ;;  %vm1744_vm14 = vcmask 1046528   ;;  %vm4889_vm15 = vmpackc.low %vm1841_vm7, %vm1841_vm7 }
  0x31   :  { %3776 = vmatprep.subr.bf16.mxu1 %v363_v62 }
  0x32   :  { %3761 = vmatmul.mubr.msk.bf16.gmra.mrb[20].mxu0 %vm88_vm2, %v74_v49  ;;  %3777 = vmatpush3.bf16.msra.mxu1 %v363_v62 }
  0x33   :  { %3764 = vmatprep.mubr.msk.bf16.mxu0 %vm88_vm2, %v75_v50  ;;  %3778 = vmatprep.subr.bf16.mxu1 %v364_v1 }
  0x36   :  { %3779 = vmatpush3.bf16.msra.mxu1 %v364_v1 }
  0x3a   :  { %3765 = vmatmul.mubr.msk.bf16.gmra.mrb[24].mxu0 %vm88_vm2, %v76_v55 }
  0x3b   :  { %3768 = vmatprep.mubr.msk.bf16.mxu0 %vm88_vm2, %v77_v56 }
  0x42   :  { %3769 = vmatmul.mubr.msk.bf16.gmra.mrb[28].mxu0 %vm88_vm2, %v78_v59 }
  0xdd   :  { %v3742_v3 = vpop.f32.mrb[0].mxu0 }
  0xde   :  { %v187_v4 = vadd.f32 %v3742_v3, %v4314_v2  ;;  %v178_v5 = vpop.f32.mrb[1].mxu0 }
  0xdf   :  { %v179_v7 = vadd.f32 %v4314_v2, %v178_v5  ;;  %v3743_v8 = vpop.f32.mrb[2].mxu0 }
  0xe0   :  { %v190_v9 = vadd.f32 %v3743_v8, %v4314_v2  ;;  %v181_v10 = vpop.f32.mrb[3].mxu0  ;;  %v307_v12 = vmax.f32 %v187_v4, 0.0 }
  0xe1   :  { %v182_v11 = vadd.f32 %v4314_v2, %v181_v10  ;;  %v305_v14 = vmax.f32 %v179_v7, 0.0 }
  0xe2   :  { %v308_v13 = vmax.f32 %v190_v9, 0.0 }
  0xe3   :  { %v306_v15 = vmax.f32 %v182_v11, 0.0 }
  0xe4   :  { %v338_v16 = vpack.c.bf16 %v308_v13, %v307_v12 }
  0xe5   :  { %v3746_v17 = vpop.f32.mrb[4].mxu0  ;;  %v337_v18 = vpack.c.bf16 %v306_v15, %v305_v14 }
  0xe6   :  { %v203_v19 = vadd.f32 %v3746_v17, %v4314_v2  ;;  %v194_v20 = vpop.f32.mrb[5].mxu0 }
  0xe7   :  { %v195_v21 = vadd.f32 %v4314_v2, %v194_v20  ;;  %v3747_v22 = vpop.f32.mrb[6].mxu0  ;;  %3780 = vmatprep.mubr.msk.bf16.mxu1 %vm372_vm3, %v337_v18 }
  0xe8   :  { %v206_v23 = vadd.f32 %v3747_v22, %v4314_v2  ;;  %v197_v24 = vpop.f32.mrb[7].mxu0  ;;  %3781 = vmatmul.mubr.msk.bf16.vlgmr.msra.gmra.mrb[0].mxu1 %vm372_vm3, %v338_v16  ;;  %v311_v26 = vmax.f32 %v203_v19, 0.0 }
  0xe9   :  { %v198_v25 = vadd.f32 %v4314_v2, %v197_v24  ;;  %v309_v28 = vmax.f32 %v195_v21, 0.0 }
  0xea   :  { %v312_v27 = vmax.f32 %v206_v23, 0.0 }
  0xeb   :  { %v310_v29 = vmax.f32 %v198_v25, 0.0 }
  0xec   :  { %v340_v30 = vpack.c.bf16 %v312_v27, %v311_v26 }
  0xed   :  { %v339_v31 = vpack.c.bf16 %v310_v29, %v309_v28  ;;  %v3750_v32 = vpop.f32.mrb[8].mxu0 }
  0xee   :  { %v219_v33 = vadd.f32 %v3750_v32, %v4314_v2  ;;  %v210_v34 = vpop.f32.mrb[9].mxu0 }
  0xef   :  { %v211_v35 = vadd.f32 %v4314_v2, %v210_v34  ;;  %v3751_v36 = vpop.f32.mrb[10].mxu0  ;;  %3784 = vmatprep.mubr.msk.bf16.mxu1 %vm372_vm3, %v339_v31 }
  0xf0   :  { %v222_v37 = vadd.f32 %v3751_v36, %v4314_v2  ;;  %v213_v38 = vpop.f32.mrb[11].mxu0  ;;  %3785 = vmatmul.mubr.msk.bf16.gmra.mrb[4].mxu1 %vm372_vm3, %v340_v30  ;;  %v315_v40 = vmax.f32 %v219_v33, 0.0 }
  0xf1   :  { %v214_v39 = vadd.f32 %v4314_v2, %v213_v38  ;;  %v313_v42 = vmax.f32 %v211_v35, 0.0 }
  0xf2   :  { %v316_v41 = vmax.f32 %v222_v37, 0.0 }
  0xf3   :  { %v314_v43 = vmax.f32 %v214_v39, 0.0 }
  0xf4   :  { %v342_v44 = vpack.c.bf16 %v316_v41, %v315_v40 }
  0xf5   :  { %v341_v45 = vpack.c.bf16 %v314_v43, %v313_v42  ;;  %v3754_v46 = vpop.f32.mrb[12].mxu0 }
  0xf6   :  { %v235_v47 = vadd.f32 %v3754_v46, %v4314_v2  ;;  %v226_v48 = vpop.f32.mrb[13].mxu0 }
  0xf7   :  { %v227_v49 = vadd.f32 %v4314_v2, %v226_v48  ;;  %v3755_v50 = vpop.f32.mrb[14].mxu0  ;;  %3788 = vmatprep.mubr.msk.bf16.mxu1 %vm372_vm3, %v341_v45 }
  0xf8   :  { %v238_v51 = vadd.f32 %v3755_v50, %v4314_v2  ;;  %v229_v52 = vpop.f32.mrb[15].mxu0  ;;  %3789 = vmatmul.mubr.msk.bf16.gmra.mrb[8].mxu1 %vm372_vm3, %v342_v44  ;;  %v319_v54 = vmax.f32 %v235_v47, 0.0 }
  0xf9   :  { %v230_v53 = vadd.f32 %v4314_v2, %v229_v52  ;;  %v317_v56 = vmax.f32 %v227_v49, 0.0 }
  0xfa   :  { %v320_v55 = vmax.f32 %v238_v51, 0.0 }
  0xfb   :  { %v318_v57 = vmax.f32 %v230_v53, 0.0 }
  0xfc   :  { %v344_v58 = vpack.c.bf16 %v320_v55, %v319_v54  ;;  %v3908_v54 = vld [vmem:[%s5264_s6] ss:$48 sps:$4 sm:$0xff]   ;;  %v3910_v55 = vld [vmem:[%s5264_s6 + $0x4] ss:$48 sps:$4 sm:$0xff]  }
  0xfd   :  { %v343_v59 = vpack.c.bf16 %v318_v57, %v317_v56  ;;  %v3758_v60 = vpop.f32.mrb[16].mxu0  ;;  %v3913_v56 = vld [vmem:[%s5264_s6 + $0xc] ss:$48 sps:$4 sm:$0xff]   ;;  %v3916_v57 = vld [vmem:[%s5264_s6 + $0x64] ss:$48 sps:$4 sm:$0xff]   ;;  %1306 = vmatprep.subr.bf16.mxu0 %v3910_v55 }
  0xfe   :  { %v251_v61 = vadd.f32 %v3758_v60, %v4314_v2  ;;  %v242_v62 = vpop.f32.mrb[17].mxu0  ;;  %1347 = vmatprep.subr.bf16.mxu1 %v3913_v56  ;;  %1307 = vmatpush1.bf16.msra.mxu0 %v3908_v54  ;;  %v3917_v60 = vld [vmem:[%s5264_s6 + $0x68] ss:$48 sps:$4 sm:$0xff]  }
  0xff   :  { %v243_v63 = vadd.f32 %v4314_v2, %v242_v62  ;;  %v3759_v0 = vpop.f32.mrb[18].mxu0  ;;  %3792 = vmatprep.mubr.msk.bf16.mxu1 %vm372_vm3, %v343_v59  ;;  %v3914_v59 = vld [vmem:[%s5264_s6 + $0x60] ss:$48 sps:$4 sm:$0xff]   ;;  %1308 = vmatprep.subr.bf16.mxu0 %v3916_v57  ;;  %v3925_v62 = vld [vmem:[%s5264_s6 + $0xcc] ss:$48 sps:$4 sm:$0xff]  }
 0x100   :  { %v254_v1 = vadd.f32 %v3759_v0, %v4314_v2  ;;  %v245_v3 = vpop.f32.mrb[19].mxu0  ;;  %3793 = vmatmul.mubr.msk.bf16.gmra.mrb[12].mxu1 %vm372_vm3, %v344_v58  ;;  %v323_v5 = vmax.f32 %v251_v61, 0.0  ;;  %v3919_v58 = vld [vmem:[%s5264_s6 + $0x6c] ss:$48 sps:$4 sm:$0xff]   ;;  %v3922_v61 = vld [vmem:[%s5264_s6 + $0xc4] ss:$48 sps:$4 sm:$0xff]  }
 0x101   :  { %v246_v4 = vadd.f32 %v4314_v2, %v245_v3  ;;  %v321_v8 = vmax.f32 %v243_v63, 0.0  ;;  %v3920_v63 = vld [vmem:[%s5264_s6 + $0xc0] ss:$48 sps:$4 sm:$0xff]   ;;  %v3923_v0 = vld [vmem:[%s5264_s6 + $0xc8] ss:$48 sps:$4 sm:$0xff]  }
 0x102   :  { %v324_v7 = vmax.f32 %v254_v1, 0.0  ;;  %1309 = vmatpush1.bf16.msra.mxu0 %v3914_v59  ;;  %v3928_v1 = vld [vmem:[%s5264_s6 + $0x124] ss:$48 sps:$4 sm:$0xff]   ;;  %v3931_v3 = vld [vmem:[%s5264_s6 + $0x12c] ss:$48 sps:$4 sm:$0xff]  }
 0x103   :  { %v322_v9 = vmax.f32 %v246_v4, 0.0  ;;  %1310 = vmatprep.subr.bf16.mxu0 %v3922_v61  ;;  %v3926_v4 = vld [vmem:[%s5264_s6 + $0x120] ss:$48 sps:$4 sm:$0xff]  }
 0x104   :  { %v346_v10 = vpack.c.bf16 %v324_v7, %v323_v5  ;;  %v3929_v5 = vld [vmem:[%s5264_s6 + $0x128] ss:$48 sps:$4 sm:$0xff]   ;;  %v3934_v7 = vld [vmem:[%s5264_s6 + $0x184] ss:$48 sps:$4 sm:$0xff]  }
 0x105   :  { %v345_v11 = vpack.c.bf16 %v322_v9, %v321_v8  ;;  %v3762_v12 = vpop.f32.mrb[20].mxu0  ;;  %v3937_v8 = vld [vmem:[%s5264_s6 + $0x18c] ss:$48 sps:$4 sm:$0xff]   ;;  %v3932_v9 = vld [vmem:[%s5264_s6 + $0x180] ss:$48 sps:$4 sm:$0xff]  }
 0x106   :  { %v267_v13 = vadd.f32 %v3762_v12, %v4314_v2  ;;  %v258_v14 = vpop.f32.mrb[21].mxu0  ;;  %1311 = vmatpush1.bf16.msra.mxu0 %v3920_v63  ;;  %v3943_v12 = vld [vmem:[%s5264_s6 + $0x1ec] ss:$48 sps:$4 sm:$0xff]  }
 0x107   :  { %v259_v15 = vadd.f32 %v4314_v2, %v258_v14  ;;  %v3763_v16 = vpop.f32.mrb[22].mxu0  ;;  %3796 = vmatprep.mubr.msk.bf16.mxu1 %vm372_vm3, %v345_v11  ;;  %1312 = vmatprep.subr.bf16.mxu0 %v3928_v1  ;;  %v3940_v11 = vld [vmem:[%s5264_s6 + $0x1e4] ss:$48 sps:$4 sm:$0xff]   ;;  %v3941_v14 = vld [vmem:[%s5264_s6 + $0x1e8] ss:$48 sps:$4 sm:$0xff]  }
 0x108   :  { %v270_v17 = vadd.f32 %v3763_v16, %v4314_v2  ;;  %v261_v18 = vpop.f32.mrb[23].mxu0  ;;  %3797 = vmatmul.mubr.msk.bf16.gmra.mrb[16].mxu1 %vm372_vm3, %v346_v10  ;;  %v327_v20 = vmax.f32 %v267_v13, 0.0  ;;  %v3935_v10 = vld [vmem:[%s5264_s6 + $0x188] ss:$48 sps:$4 sm:$0xff]   ;;  %v3938_v13 = vld [vmem:[%s5264_s6 + $0x1e0] ss:$48 sps:$4 sm:$0xff]  }
 0x109   :  { %v262_v19 = vadd.f32 %v4314_v2, %v261_v18  ;;  %v325_v22 = vmax.f32 %v259_v15, 0.0  ;;  %v3946_v15 = vld [vmem:[%s5264_s6 + $0x244] ss:$48 sps:$4 sm:$0xff]   ;;  %v3949_v16 = vld [vmem:[%s5264_s6 + $0x24c] ss:$48 sps:$4 sm:$0xff]  }
 0x10a   :  { %v328_v21 = vmax.f32 %v270_v17, 0.0  ;;  %1313 = vmatpush1.bf16.msra.mxu0 %v3926_v4  ;;  %v3944_v17 = vld [vmem:[%s5264_s6 + $0x240] ss:$48 sps:$4 sm:$0xff]   ;;  %v3947_v18 = vld [vmem:[%s5264_s6 + $0x248] ss:$48 sps:$4 sm:$0xff]  }
 0x10b   :  { %v326_v23 = vmax.f32 %v262_v19, 0.0  ;;  %1314 = vmatprep.subr.bf16.mxu0 %v3934_v7  ;;  %v3952_v19 = vld [vmem:[%s5264_s6 + $0x2a4] ss:$48 sps:$4 sm:$0xff]  }
 0x10c   :  { %v348_v24 = vpack.c.bf16 %v328_v21, %v327_v20  ;;  %v3955_v20 = vld [vmem:[%s5264_s6 + $0x2ac] ss:$48 sps:$4 sm:$0xff]   ;;  %v3950_v21 = vld [vmem:[%s5264_s6 + $0x2a0] ss:$48 sps:$4 sm:$0xff]  }
 0x10d   :  { %v347_v25 = vpack.c.bf16 %v326_v23, %v325_v22  ;;  %v3766_v26 = vpop.f32.mrb[24].mxu0  ;;  %v3953_v22 = vld [vmem:[%s5264_s6 + $0x2a8] ss:$48 sps:$4 sm:$0xff]   ;;  %v3958_v23 = vld [vmem:[%s5264_s6 + $0x14] ss:$48 sps:$4 sm:$0xff]  }
 0x10e   :  { %v283_v27 = vadd.f32 %v3766_v26, %v4314_v2  ;;  %v274_v28 = vpop.f32.mrb[25].mxu0  ;;  %1315 = vmatpush1.bf16.msra.mxu0 %v3932_v9  ;;  %v4471_v26 = vld [vmem:[%s5263_s5] ss:$0 sm:$0xff] }
 0x10f   :  { %v275_v29 = vadd.f32 %v4314_v2, %v274_v28  ;;  %v3767_v30 = vpop.f32.mrb[26].mxu0  ;;  %3800 = vmatprep.mubr.msk.bf16.mxu1 %vm372_vm3, %v347_v25  ;;  %1316 = vmatprep.subr.bf16.mxu0 %v3940_v11  ;;  %v4111_v25 = vmov 0  }
 0x110   :  { %v286_v31 = vadd.f32 %v3767_v30, %v4314_v2  ;;  %v277_v32 = vpop.f32.mrb[27].mxu0  ;;  %3801 = vmatmul.mubr.msk.bf16.gmra.mrb[20].mxu1 %vm372_vm3, %v348_v24  ;;  %v331_v34 = vmax.f32 %v283_v27, 0.0  ;;  %v3961_v24 = vld [vmem:[%s5264_s6 + $0x1c] ss:$48 sps:$4 sm:$0xff]   ;;  %1338 = vmatprep.mubr.bf16.mxu0 %v4111_v25 }
 0x111   :  { %v278_v33 = vadd.f32 %v4314_v2, %v277_v32  ;;  %v329_v36 = vmax.f32 %v275_v29, 0.0 }
 0x112   :  { %v332_v35 = vmax.f32 %v286_v31, 0.0  ;;  %1317 = vmatpush1.bf16.msra.mxu0 %v3938_v13 }
 0x113   :  { %v330_v37 = vmax.f32 %v278_v33, 0.0  ;;  %1318 = vmatprep.subr.bf16.mxu0 %v3946_v15 }
 0x114   :  { %v350_v38 = vpack.c.bf16 %v332_v35, %v331_v34 }
 0x115   :  { %v349_v39 = vpack.c.bf16 %v330_v37, %v329_v36  ;;  %v3770_v40 = vpop.f32.mrb[28].mxu0 }
 0x116   :  { %v299_v41 = vadd.f32 %v3770_v40, %v4314_v2  ;;  %v290_v42 = vpop.f32.mrb[29].mxu0  ;;  %1319 = vmatpush1.bf16.msra.mxu0 %v3944_v17 }
 0x117   :  { %v291_v43 = vadd.f32 %v4314_v2, %v290_v42  ;;  %v3771_v44 = vpop.f32.mrb[30].mxu0  ;;  %3804 = vmatprep.mubr.msk.bf16.mxu1 %vm372_vm3, %v349_v39  ;;  %1320 = vmatprep.subr.bf16.mxu0 %v3952_v19 }
 0x118   :  { %v302_v45 = vadd.f32 %v3771_v44, %v4314_v2  ;;  %v293_v46 = vpop.f32.mrb[31].mxu0  ;;  %3805 = vmatmul.mubr.msk.bf16.gmra.mrb[24].mxu1 %vm372_vm3, %v350_v38  ;;  %v335_v48 = vmax.f32 %v299_v41, 0.0 }
 0x119   :  { %v294_v47 = vadd.f32 %v4314_v2, %v293_v46  ;;  %v333_v50 = vmax.f32 %v291_v43, 0.0  ;;  %v3911_v2 = vld [vmem:[%s5264_s6 + $0x8] ss:$48 sps:$4 sm:$0xff]  }
 0x11a   :  { %v336_v49 = vmax.f32 %v302_v45, 0.0  ;;  %1348 = vmatpush1.bf16.msra.mxu1 %v3911_v2  ;;  %1321 = vmatpush1.bf16.msra.mxu0 %v3950_v21 }
 0x11b   :  { %v334_v51 = vmax.f32 %v294_v47, 0.0  ;;  %1349 = vmatprep.subr.bf16.mxu1 %v3919_v58  ;;  %1388 = vmatprep.subr.bf16.mxu0 %v3958_v23 }
 0x11c   :  { %v352_v52 = vpack.c.bf16 %v336_v49, %v335_v48 }
 0x11d   :  { %v351_v53 = vpack.c.bf16 %v334_v51, %v333_v50 }
 0x11e   :  { %1350 = vmatpush1.bf16.msra.mxu1 %v3917_v60 }
 0x11f   :  { %3808 = vmatprep.mubr.msk.bf16.mxu1 %vm372_vm3, %v351_v53  ;;  %1351 = vmatprep.subr.bf16.mxu1 %v3925_v62 }
 0x120   :  { %3809 = vmatmul.mubr.msk.bf16.gmra.mrb[28].mxu1 %vm372_vm3, %v352_v52 }
 0x121   :  { %1379 = vmatprep.mubr.bf16.mxu1 %v4111_v25 }
 0x122   :  { %1352 = vmatpush1.bf16.msra.mxu1 %v3923_v0 }
 0x123   :  { %1353 = vmatprep.subr.bf16.mxu1 %v3931_v3 }
 0x126   :  { %1354 = vmatpush1.bf16.msra.mxu1 %v3929_v5 }
 0x127   :  { %1355 = vmatprep.subr.bf16.mxu1 %v3937_v8 }
 0x12a   :  { %1356 = vmatpush1.bf16.msra.mxu1 %v3935_v10 }
 0x12b   :  { %1357 = vmatprep.subr.bf16.mxu1 %v3943_v12 }
 0x12e   :  { %1358 = vmatpush1.bf16.msra.mxu1 %v3941_v14 }
 0x12f   :  { %1359 = vmatprep.subr.bf16.mxu1 %v3949_v16 }
 0x132   :  { %1360 = vmatpush1.bf16.msra.mxu1 %v3947_v18 }
 0x133   :  { %1361 = vmatprep.subr.bf16.mxu1 %v3955_v20 }
 0x136   :  { %1362 = vmatpush1.bf16.msra.mxu1 %v3953_v22 }
 0x137   :  { %1429 = vmatprep.subr.bf16.mxu1 %v3961_v24 }
 0x1bb   :  { %v3782_v27 = vpop.f32.mrb[0].mxu1 }
 0x1bc   :  { %v464_v28 = vadd.f32 %v3782_v27, %v4471_v26  ;;  %v455_v29 = vpop.f32.mrb[1].mxu1 }
 0x1bd   :  { %v456_v30 = vadd.f32 %v4471_v26, %v455_v29  ;;  %v3783_v31 = vpop.f32.mrb[2].mxu1 }
 0x1be   :  { %v584_v32 = vmax.f32 %v464_v28, 0.0  ;;  %v467_v33 = vadd.f32 %v3783_v31, %v4471_v26  ;;  %v458_v34 = vpop.f32.mrb[3].mxu1 }
 0x1bf   :  { %v582_v35 = vmax.f32 %v456_v30, 0.0  ;;  %v459_v36 = vadd.f32 %v4471_v26, %v458_v34 }
 0x1c0   :  { %v585_v37 = vmax.f32 %v467_v33, 0.0 }
 0x1c1   :  { %v614_v38 = vmax.f32 %v582_v35, %v584_v32  ;;  %v583_v39 = vmax.f32 %v459_v36, 0.0 }
 0x1c3   :  { %v615_v40 = vmax.f32 %v583_v39, %v585_v37  ;;  %v3786_v41 = vpop.f32.mrb[4].mxu1 }
 0x1c4   :  { %v471_v42 = vpop.f32.mrb[5].mxu1  ;;  %v480_v43 = vadd.f32 %v3786_v41, %v4471_v26 }
 0x1c5   :  { %v472_v44 = vadd.f32 %v4471_v26, %v471_v42  ;;  %v3787_v45 = vpop.f32.mrb[6].mxu1 }
 0x1c6   :  { %v474_v46 = vpop.f32.mrb[7].mxu1  ;;  %v483_v48 = vadd.f32 %v3787_v45, %v4471_v26  ;;  %v588_v50 = vmax.f32 %v480_v43, 0.0 }
 0x1c7   :  { %v586_v47 = vmax.f32 %v472_v44, 0.0  ;;  %v475_v49 = vadd.f32 %v4471_v26, %v474_v46 }
 0x1c8   :  { %v589_v53 = vmax.f32 %v483_v48, 0.0 }
 0x1c9   :  { %v616_v51 = vmax.f32 %v614_v38, %v586_v47  ;;  %v587_v52 = vmax.f32 %v475_v49, 0.0 }
 0x1cb   :  { %v617_v54 = vmax.f32 %v615_v40, %v587_v52  ;;  %v3790_v55 = vpop.f32.mrb[8].mxu1  ;;  %v618_v2 = vmax.f32 %v616_v51, %v588_v50 }
 0x1cc   :  { %v487_v56 = vpop.f32.mrb[9].mxu1  ;;  %v496_v57 = vadd.f32 %v3790_v55, %v4471_v26 }
 0x1cd   :  { %v488_v58 = vadd.f32 %v4471_v26, %v487_v56  ;;  %v3791_v59 = vpop.f32.mrb[10].mxu1  ;;  %v619_v60 = vmax.f32 %v617_v54, %v589_v53 }
 0x1ce   :  { %v490_v61 = vpop.f32.mrb[11].mxu1  ;;  %v499_v63 = vadd.f32 %v3791_v59, %v4471_v26  ;;  %v592_v1 = vmax.f32 %v496_v57, 0.0 }
 0x1cf   :  { %v590_v62 = vmax.f32 %v488_v58, 0.0  ;;  %v491_v0 = vadd.f32 %v4471_v26, %v490_v61 }
 0x1d0   :  { %v593_v5 = vmax.f32 %v499_v63, 0.0 }
 0x1d1   :  { %v620_v3 = vmax.f32 %v618_v2, %v590_v62  ;;  %v591_v4 = vmax.f32 %v491_v0, 0.0 }
 0x1d3   :  { %v621_v7 = vmax.f32 %v619_v60, %v591_v4  ;;  %v3794_v8 = vpop.f32.mrb[12].mxu1  ;;  %v622_v9 = vmax.f32 %v620_v3, %v592_v1 }
 0x1d4   :  { %v503_v10 = vpop.f32.mrb[13].mxu1  ;;  %v512_v11 = vadd.f32 %v3794_v8, %v4471_v26 }
 0x1d5   :  { %v504_v12 = vadd.f32 %v4471_v26, %v503_v10  ;;  %v3795_v13 = vpop.f32.mrb[14].mxu1  ;;  %v623_v14 = vmax.f32 %v621_v7, %v593_v5 }
 0x1d6   :  { %v506_v15 = vpop.f32.mrb[15].mxu1  ;;  %v515_v17 = vadd.f32 %v3795_v13, %v4471_v26  ;;  %v596_v19 = vmax.f32 %v512_v11, 0.0 }
 0x1d7   :  { %v594_v16 = vmax.f32 %v504_v12, 0.0  ;;  %v507_v18 = vadd.f32 %v4471_v26, %v506_v15 }
 0x1d8   :  { %v597_v23 = vmax.f32 %v515_v17, 0.0 }
 0x1d9   :  { %v624_v20 = vmax.f32 %v622_v9, %v594_v16  ;;  %v595_v21 = vmax.f32 %v507_v18, 0.0 }
 0x1db   :  { %v626_v22 = vmax.f32 %v624_v20, %v596_v19  ;;  %v625_v24 = vmax.f32 %v623_v14, %v595_v21  ;;  %v3798_v27 = vpop.f32.mrb[16].mxu1 }
 0x1dc   :  { %v528_v28 = vadd.f32 %v3798_v27, %v4471_v26  ;;  %v519_v29 = vpop.f32.mrb[17].mxu1 }
 0x1dd   :  { %v627_v30 = vmax.f32 %v625_v24, %v597_v23  ;;  %v520_v31 = vadd.f32 %v4471_v26, %v519_v29  ;;  %v3799_v32 = vpop.f32.mrb[18].mxu1 }
 0x1de   :  { %v600_v33 = vmax.f32 %v528_v28, 0.0  ;;  %v531_v34 = vadd.f32 %v3799_v32, %v4471_v26  ;;  %v522_v35 = vpop.f32.mrb[19].mxu1 }
 0x1df   :  { %v628_v36 = vmax.f32 %v626_v22, %v627_v30  ;;  %v598_v37 = vmax.f32 %v520_v31, 0.0  ;;  %v523_v38 = vadd.f32 %v4471_v26, %v522_v35 }
 0x1e0   :  { %v601_v39 = vmax.f32 %v531_v34, 0.0 }
 0x1e1   :  { %v635_v40 = vmax.f32 %v598_v37, %v600_v33  ;;  %v599_v41 = vmax.f32 %v523_v38, 0.0  ;;  %v629_v8 = vrot.slane %v628_v36, 4 }
 0x1e3   :  { %v636_v42 = vmax.f32 %v599_v41, %v601_v39  ;;  %v3802_v43 = vpop.f32.mrb[20].mxu1  ;;  %v630_v19 = vmax.f32 %v628_v36, %v629_v8  ;;  %v3997_v8 = vld [vmem:[%s5264_s6 + $0x25c] ss:$48 sps:$4 sm:$0xff]  }
 0x1e4   :  { %v535_v44 = vpop.f32.mrb[21].mxu1  ;;  %v544_v45 = vadd.f32 %v3802_v43, %v4471_v26 }
 0x1e5   :  { %v536_v46 = vadd.f32 %v4471_v26, %v535_v44  ;;  %v3803_v47 = vpop.f32.mrb[22].mxu1  ;;  %v631_v28 = vrot.slane %v630_v19, 2 }
 0x1e6   :  { %v538_v48 = vpop.f32.mrb[23].mxu1  ;;  %v547_v50 = vadd.f32 %v3803_v47, %v4471_v26  ;;  %v604_v52 = vmax.f32 %v544_v45, 0.0  ;;  %v3959_v47 = vld [vmem:[%s5264_s6 + $0x18] ss:$48 sps:$4 sm:$0xff]  }
 0x1e7   :  { %v602_v49 = vmax.f32 %v536_v46, 0.0  ;;  %v539_v51 = vadd.f32 %v4471_v26, %v538_v48  ;;  %v632_v33 = vmax.f32 %v630_v19, %v631_v28  ;;  %v3956_v46 = vld [vmem:[%s5264_s6 + $0x10] ss:$48 sps:$4 sm:$0xff]   ;;  %v4012_v19 = vld [vmem:[%s5264_s6 + $0x84] ss:$48 sps:$4 sm:$0xff]  }
 0x1e8   :  { %v605_v55 = vmax.f32 %v547_v50, 0.0  ;;  %v3964_v50 = vld [vmem:[%s5264_s6 + $0x74] ss:$48 sps:$4 sm:$0xff]   ;;  %v4019_v28 = vld [vmem:[%s5264_s6 + $0xe8] ss:$48 sps:$4 sm:$0xff]  }
 0x1e9   :  { %v637_v53 = vmax.f32 %v635_v40, %v602_v49  ;;  %v603_v54 = vmax.f32 %v539_v51, 0.0  ;;  %v633_v37 = vrot.slane %v632_v33, 1  ;;  %v3967_v51 = vld [vmem:[%s5264_s6 + $0x7c] ss:$48 sps:$4 sm:$0xff]  }
 0x1eb   :  { %v638_v2 = vmax.f32 %v636_v42, %v603_v54  ;;  %v3806_v56 = vpop.f32.mrb[24].mxu1  ;;  %v639_v57 = vmax.f32 %v637_v53, %v604_v52  ;;  %v634_v36 = vmax.f32 %v632_v33, %v633_v37  ;;  %v3962_v52 = vld [vmem:[%s5264_s6 + $0x70] ss:$48 sps:$4 sm:$0xff]   ;;  %v3965_v53 = vld [vmem:[%s5264_s6 + $0x78] ss:$48 sps:$4 sm:$0xff]  }
 0x1ec   :  { %v551_v58 = vpop.f32.mrb[25].mxu1  ;;  %v560_v59 = vadd.f32 %v3806_v56, %v4471_v26  ;;  %v3970_v54 = vld [vmem:[%s5264_s6 + $0xd4] ss:$48 sps:$4 sm:$0xff]   ;;  %v3971_v56 = vld [vmem:[%s5264_s6 + $0xd8] ss:$48 sps:$4 sm:$0xff]  }
 0x1ed   :  { %v552_v60 = vadd.f32 %v4471_v26, %v551_v58  ;;  %v3807_v61 = vpop.f32.mrb[26].mxu1  ;;  %v640_v62 = vmax.f32 %v638_v2, %v605_v55  ;;  %v656_v42 = vpack.c.bf16 %v634_v36, %v634_v36  ;;  %v3973_v55 = vld [vmem:[%s5264_s6 + $0xdc] ss:$48 sps:$4 sm:$0xff]   ;;  %v3968_v2 = vld [vmem:[%s5264_s6 + $0xd0] ss:$48 sps:$4 sm:$0xff]  }
 0x1ee   :  { %v554_v63 = vpop.f32.mrb[27].mxu1  ;;  %v563_v1 = vadd.f32 %v3807_v61, %v4471_v26  ;;  %v608_v4 = vmax.f32 %v560_v59, 0.0  ;;  %v3979_v58 = vld [vmem:[%s5264_s6 + $0x13c] ss:$48 sps:$4 sm:$0xff]   ;;  %v3974_v59 = vld [vmem:[%s5264_s6 + $0x130] ss:$48 sps:$4 sm:$0xff]  }
 0x1ef   :  { %v606_v0 = vmax.f32 %v552_v60, 0.0  ;;  %v555_v3 = vadd.f32 %v4471_v26, %v554_v63  ;;  %v820_v44 = vunpack.c.l.b16 %v656_v42  ;;  %v3977_v60 = vld [vmem:[%s5264_s6 + $0x138] ss:$48 sps:$4 sm:$0xff]   ;;  %v3982_v61 = vld [vmem:[%s5264_s6 + $0x194] ss:$48 sps:$4 sm:$0xff]  }
 0x1f0   :  { %v609_v9 = vmax.f32 %v563_v1, 0.0  ;;  %v3980_v63 = vld [vmem:[%s5264_s6 + $0x190] ss:$48 sps:$4 sm:$0xff]   ;;  %v3988_v1 = vld [vmem:[%s5264_s6 + $0x1f4] ss:$48 sps:$4 sm:$0xff]  }
 0x1f1   :  { %v641_v5 = vmax.f32 %v639_v57, %v606_v0  ;;  %v607_v7 = vmax.f32 %v555_v3, 0.0  ;;  %v3976_v57 = vld [vmem:[%s5264_s6 + $0x134] ss:$48 sps:$4 sm:$0xff]   ;;  %v3983_v0 = vld [vmem:[%s5264_s6 + $0x198] ss:$48 sps:$4 sm:$0xff]  }
 0x1f2   :  { %v3991_v3 = vld [vmem:[%s5264_s6 + $0x1fc] ss:$48 sps:$4 sm:$0xff]   ;;  %v4030_v33 = vld [vmem:[%s5264_s6 + $0x1a4] ss:$48 sps:$4 sm:$0xff]   ;;  %v4031_v37 = vld [vmem:[%s5264_s6 + $0x1a8] ss:$48 sps:$4 sm:$0xff]  }
 0x1f3   :  { %v642_v10 = vmax.f32 %v640_v62, %v607_v7  ;;  %v3810_v11 = vpop.f32.mrb[28].mxu1  ;;  %v643_v12 = vmax.f32 %v641_v5, %v608_v4  ;;  %v3985_v62 = vld [vmem:[%s5264_s6 + $0x19c] ss:$48 sps:$4 sm:$0xff]   ;;  %v3986_v4 = vld [vmem:[%s5264_s6 + $0x1f0] ss:$48 sps:$4 sm:$0xff]  }
 0x1f4   :  { %v567_v13 = vpop.f32.mrb[29].mxu1  ;;  %v576_v14 = vadd.f32 %v3810_v11, %v4471_v26  ;;  %v3989_v5 = vld [vmem:[%s5264_s6 + $0x1f8] ss:$48 sps:$4 sm:$0xff]   ;;  %v3994_v7 = vld [vmem:[%s5264_s6 + $0x254] ss:$48 sps:$4 sm:$0xff]  }
 0x1f5   :  { %v568_v15 = vadd.f32 %v4471_v26, %v567_v13  ;;  %v3811_v16 = vpop.f32.mrb[30].mxu1  ;;  %v644_v17 = vmax.f32 %v642_v10, %v609_v9  ;;  %v3992_v9 = vld [vmem:[%s5264_s6 + $0x250] ss:$48 sps:$4 sm:$0xff]   ;;  %v3995_v10 = vld [vmem:[%s5264_s6 + $0x258] ss:$48 sps:$4 sm:$0xff]  }
 0x1f6   :  { %v570_v18 = vpop.f32.mrb[31].mxu1  ;;  %v579_v21 = vadd.f32 %v3811_v16, %v4471_v26  ;;  %v612_v23 = vmax.f32 %v576_v14, 0.0  ;;  %v4000_v11 = vld [vmem:[%s5264_s6 + $0x2b4] ss:$48 sps:$4 sm:$0xff]   ;;  %v3998_v13 = vld [vmem:[%s5264_s6 + $0x2b0] ss:$48 sps:$4 sm:$0xff]  }
 0x1f7   :  { %v610_v20 = vmax.f32 %v568_v15, 0.0  ;;  %v571_v22 = vadd.f32 %v4471_v26, %v570_v18  ;;  %v4001_v14 = vld [vmem:[%s5264_s6 + $0x2b8] ss:$48 sps:$4 sm:$0xff]   ;;  %v4006_v15 = vld [vmem:[%s5264_s6 + $0x24] ss:$48 sps:$4 sm:$0xff]  }
 0x1f8   :  { %v613_v30 = vmax.f32 %v579_v21, 0.0  ;;  %v4009_v16 = vld [vmem:[%s5264_s6 + $0x2c] ss:$48 sps:$4 sm:$0xff]   ;;  %v4007_v18 = vld [vmem:[%s5264_s6 + $0x28] ss:$48 sps:$4 sm:$0xff]  }
 0x1f9   :  { %v645_v24 = vmax.f32 %v643_v12, %v610_v20  ;;  %v611_v27 = vmax.f32 %v571_v22, 0.0  ;;  %v4003_v12 = vld [vmem:[%s5264_s6 + $0x2bc] ss:$48 sps:$4 sm:$0xff]   ;;  %v4010_v21 = vld [vmem:[%s5264_s6 + $0x80] ss:$48 sps:$4 sm:$0xff]  }
 0x1fa   :  { %v4015_v20 = vld [vmem:[%s5264_s6 + $0x8c] ss:$48 sps:$4 sm:$0xff]   ;;  %v4013_v22 = vld [vmem:[%s5264_s6 + $0x88] ss:$48 sps:$4 sm:$0xff]   ;;  %v4034_v36 = vld [vmem:[%s5264_s6 + $0x200] ss:$48 sps:$4 sm:$0xff]  }
 0x1fb   :  { %v647_v29 = vmax.f32 %v645_v24, %v612_v23  ;;  %v646_v31 = vmax.f32 %v644_v17, %v611_v27  ;;  %v4004_v17 = vld [vmem:[%s5264_s6 + $0x20] ss:$48 sps:$4 sm:$0xff]   ;;  %v4018_v23 = vld [vmem:[%s5264_s6 + $0xe4] ss:$48 sps:$4 sm:$0xff]   ;;  %v4021_v24 = vld [vmem:[%s5264_s6 + $0xec] ss:$48 sps:$4 sm:$0xff]  }
 0x1fc   :  { %v4016_v27 = vld [vmem:[%s5264_s6 + $0xe0] ss:$48 sps:$4 sm:$0xff]   ;;  %v4045_v42 = vld [vmem:[%s5264_s6 + $0x26c] ss:$48 sps:$4 sm:$0xff]  }
 0x1fd   :  { %v648_v32 = vmax.f32 %v646_v31, %v613_v30  ;;  %v4027_v30 = vld [vmem:[%s5264_s6 + $0x14c] ss:$48 sps:$4 sm:$0xff]   ;;  %v4022_v31 = vld [vmem:[%s5264_s6 + $0x140] ss:$48 sps:$4 sm:$0xff]  }
 0x1ff   :  { %v649_v34 = vmax.f32 %v647_v29, %v648_v32  ;;  %v4024_v29 = vld [vmem:[%s5264_s6 + $0x144] ss:$48 sps:$4 sm:$0xff]   ;;  %v4025_v32 = vld [vmem:[%s5264_s6 + $0x148] ss:$48 sps:$4 sm:$0xff]  }
 0x201   :  { %v650_v35 = vrot.slane %v649_v34, 4 }
 0x203   :  { %v651_v38 = vmax.f32 %v649_v34, %v650_v35  ;;  %v4033_v34 = vld [vmem:[%s5264_s6 + $0x1ac] ss:$48 sps:$4 sm:$0xff]   ;;  %v4028_v35 = vld [vmem:[%s5264_s6 + $0x1a0] ss:$48 sps:$4 sm:$0xff]  }
 0x205   :  { %v652_v39 = vrot.slane %v651_v38, 2 }
 0x207   :  { %v653_v40 = vmax.f32 %v651_v38, %v652_v39  ;;  %v4036_v38 = vld [vmem:[%s5264_s6 + $0x204] ss:$48 sps:$4 sm:$0xff]   ;;  %v4039_v39 = vld [vmem:[%s5264_s6 + $0x20c] ss:$48 sps:$4 sm:$0xff]  }
 0x209   :  { %v654_v41 = vrot.slane %v653_v40, 1 }
 0x20b   :  { %v655_v43 = vmax.f32 %v653_v40, %v654_v41  ;;  %v4037_v40 = vld [vmem:[%s5264_s6 + $0x208] ss:$48 sps:$4 sm:$0xff]   ;;  %v4042_v41 = vld [vmem:[%s5264_s6 + $0x264] ss:$48 sps:$4 sm:$0xff]  }
 0x20d   :  { %v657_v26 = vpack.c.bf16 %v655_v43, %v655_v43  ;;  %v4040_v43 = vld [vmem:[%s5264_s6 + $0x260] ss:$48 sps:$4 sm:$0xff]  }
 0x20f   :  { %v821_v45 = vunpack.c.l.b16 %v657_v26  ;;  %v4043_v26 = vld [vmem:[%s5264_s6 + $0x268] ss:$48 sps:$4 sm:$0xff]  }
 0x211   :  { %v823_v48 = vsel %vm822_vm4, %v821_v45, %v820_v44  ;;  %v4048_v44 = vld [vmem:[%s5264_s6 + $0x2c4] ss:$48 sps:$4 sm:$0xff]   ;;  %v4051_v45 = vld [vmem:[%s5264_s6 + $0x2cc] ss:$48 sps:$4 sm:$0xff]  }
 0x212   :  { %v4511_v49 = vpack.c.b16 %v823_v48, %v823_v48  ;;  %v758_v48 = vlaneseq }
 0x214   :  { %1339 = vmatmul.mubr.bf16.vlgmr.msra.gmra.mrb[32].mxu0 %v4511_v49  ;;  %1380 = vmatmul.mubr.bf16.vlgmr.msra.gmra.mrb[32].mxu1 %v4511_v49 }
 0x215   :  { %1389 = vmatpush1.bf16.msra.mxu0 %v3956_v46  ;;  %1430 = vmatpush1.bf16.msra.mxu1 %v3959_v47  ;;  %v4046_v46 = vld [vmem:[%s5264_s6 + $0x2c0] ss:$48 sps:$4 sm:$0xff]   ;;  %v4049_v47 = vld [vmem:[%s5264_s6 + $0x2c8] ss:$48 sps:$4 sm:$0xff]  }
 0x216   :  { %1390 = vmatprep.subr.bf16.mxu0 %v3964_v50  ;;  %1431 = vmatprep.subr.bf16.mxu1 %v3967_v51  ;;  %v4705_v50 = vshrl.u32 %v758_v48, 7 }
 0x217   :  { %1420 = vmatprep.mubr.bf16.mxu0 %v4111_v25  ;;  %1461 = vmatprep.mubr.bf16.mxu1 %v4111_v25 }
 0x218   :  { %v4708_v51 = vsub.s32 0, %v4705_v50 }
 0x219   :  { %1391 = vmatpush1.bf16.msra.mxu0 %v3962_v52  ;;  %1432 = vmatpush1.bf16.msra.mxu1 %v3965_v53  ;;  %v768_v52 = vsub.s32 2, %v4705_v50  ;;  %v754_v53 = vld [vmem:[%s5265_s7] sm:$0xff] }
 0x21a   :  { %1392 = vmatprep.subr.bf16.mxu0 %v3970_v54  ;;  %1433 = vmatprep.subr.bf16.mxu1 %v3973_v55  ;;  %v764_v54 = vsub.s32 1, %v4705_v50  ;;  %v4112_v55 = vmov 1983009808  }
 0x21d   :  { %1393 = vmatpush1.bf16.msra.mxu0 %v3968_v2  ;;  %1434 = vmatpush1.bf16.msra.mxu1 %v3971_v56  ;;  %v1567_v2 = vunpack.c.l.s4 %v4112_v55  ;;  %v761_v56 = vrot.slane %v754_v53, %v4708_v51 }
 0x21e   :  { %1394 = vmatprep.subr.bf16.mxu0 %v3976_v57  ;;  %1435 = vmatprep.subr.bf16.mxu1 %v3979_v58  ;;  %v769_v57 = vrot.slane %v754_v53, %v768_v52  ;;  %v765_v58 = vrot.slane %v754_v53, %v764_v54 }
 0x221   :  { %1395 = vmatpush1.bf16.msra.mxu0 %v3974_v59  ;;  %1436 = vmatpush1.bf16.msra.mxu1 %v3977_v60  ;;  %v1568_v59 = vunpack.c.0.s8 %v1567_v2 }
 0x222   :  { %1396 = vmatprep.subr.bf16.mxu0 %v3982_v61  ;;  %1437 = vmatprep.subr.bf16.mxu1 %v3985_v62 }
 0x225   :  { %1397 = vmatpush1.bf16.msra.mxu0 %v3980_v63  ;;  %1438 = vmatpush1.bf16.msra.mxu1 %v3983_v0 }
 0x226   :  { %1398 = vmatprep.subr.bf16.mxu0 %v3988_v1  ;;  %1439 = vmatprep.subr.bf16.mxu1 %v3991_v3 }
 0x229   :  { %1399 = vmatpush1.bf16.msra.mxu0 %v3986_v4  ;;  %1440 = vmatpush1.bf16.msra.mxu1 %v3989_v5  ;;  %v4724_v5 = vsub.s32 %v1568_v59, %v4705_v50 }
 0x22a   :  { %1400 = vmatprep.subr.bf16.mxu0 %v3994_v7  ;;  %1441 = vmatprep.subr.bf16.mxu1 %v3997_v8 }
 0x22d   :  { %1401 = vmatpush1.bf16.msra.mxu0 %v3992_v9  ;;  %1442 = vmatpush1.bf16.msra.mxu1 %v3995_v10 }
 0x22e   :  { %1402 = vmatprep.subr.bf16.mxu0 %v4000_v11  ;;  %1443 = vmatprep.subr.bf16.mxu1 %v4003_v12 }
 0x231   :  { %1403 = vmatpush1.bf16.msra.mxu0 %v3998_v13  ;;  %1444 = vmatpush1.bf16.msra.mxu1 %v4001_v14 }
 0x232   :  { %1470 = vmatprep.subr.bf16.mxu0 %v4006_v15  ;;  %1511 = vmatprep.subr.bf16.mxu1 %v4009_v16 }
 0x234   :  { %1421 = vmatmul.mubr.bf16.vlgmr.msra.gmra.mrb[36].mxu0 %v4511_v49  ;;  %1462 = vmatmul.mubr.bf16.vlgmr.msra.gmra.mrb[36].mxu1 %v4511_v49 }
 0x235   :  { %1471 = vmatpush1.bf16.msra.mxu0 %v4004_v17  ;;  %1512 = vmatpush1.bf16.msra.mxu1 %v4007_v18  ;;  %v1639_v17 = vand.u32 127, %v758_v48  ;;  %v1635_v18 = vadd.s32 8, %v4705_v50 }
 0x236   :  { %1472 = vmatprep.subr.bf16.mxu0 %v4012_v19  ;;  %1513 = vmatprep.subr.bf16.mxu1 %v4015_v20 }
 0x237   :  { %1502 = vmatprep.mubr.bf16.mxu0 %v4111_v25  ;;  %1543 = vmatprep.mubr.bf16.mxu1 %v4111_v25  ;;  %vm1640_vm5 = vcmp.eq.s32.totalorder %v4705_v50, %v1639_v17  ;;  %vm1641_vm6 = vcmp.eq.s32.totalorder %v1635_v18, %v1639_v17 }
 0x239   :  { %1473 = vmatpush1.bf16.msra.mxu0 %v4010_v21  ;;  %1514 = vmatpush1.bf16.msra.mxu1 %v4013_v22  ;;  %v4113_v22 = vmov 0.0  }
 0x23a   :  { %1474 = vmatprep.subr.bf16.mxu0 %v4018_v23  ;;  %1515 = vmatprep.subr.bf16.mxu1 %v4021_v24  ;;  %v4737_v23 = vsel %vm1640_vm5, 1.0, %v4113_v22  ;;  %v4739_v24 = vsel %vm1641_vm6, 1.0, %v4113_v22 }
 0x23d   :  { %1475 = vmatpush1.bf16.msra.mxu0 %v4016_v27  ;;  %1516 = vmatpush1.bf16.msra.mxu1 %v4019_v28  ;;  %v1636_v27 = vadd.s32 16, %v4705_v50  ;;  %v1637_v28 = vadd.s32 24, %v4705_v50 }
 0x23e   :  { %1476 = vmatprep.subr.bf16.mxu0 %v4024_v29  ;;  %1517 = vmatprep.subr.bf16.mxu1 %v4027_v30 }
 0x23f   :  { %vm1642_vm8 = vcmp.eq.s32.totalorder %v1636_v27, %v1639_v17  ;;  %vm1643_vm9 = vcmp.eq.s32.totalorder %v1637_v28, %v1639_v17 }
 0x240   :  { %v4751_v30 = vsel %vm1642_vm8, 1.0, %v4113_v22 }
 0x241   :  { %1477 = vmatpush1.bf16.msra.mxu0 %v4022_v31  ;;  %1518 = vmatpush1.bf16.msra.mxu1 %v4025_v32  ;;  %v4753_v31 = vsel %vm1643_vm9, 1.0, %v4113_v22  ;;  %v776_v32 = vsub.s32 4, %v4705_v50 }
 0x242   :  { %1478 = vmatprep.subr.bf16.mxu0 %v4030_v33  ;;  %1519 = vmatprep.subr.bf16.mxu1 %v4033_v34  ;;  %v784_v33 = vsub.s32 6, %v4705_v50  ;;  %v780_v34 = vsub.s32 5, %v4705_v50 }
 0x245   :  { %1479 = vmatpush1.bf16.msra.mxu0 %v4028_v35  ;;  %1520 = vmatpush1.bf16.msra.mxu1 %v4031_v37  ;;  %v788_v35 = vsub.s32 7, %v4705_v50  ;;  %v777_v37 = vrot.slane %v754_v53, %v776_v32 }
 0x246   :  { %1480 = vmatprep.subr.bf16.mxu0 %v4036_v38  ;;  %1521 = vmatprep.subr.bf16.mxu1 %v4039_v39  ;;  %v785_v38 = vrot.slane %v754_v53, %v784_v33  ;;  %v781_v39 = vrot.slane %v754_v53, %v780_v34 }
 0x249   :  { %1481 = vmatpush1.bf16.msra.mxu0 %v4034_v36  ;;  %1522 = vmatpush1.bf16.msra.mxu1 %v4037_v40  ;;  %v789_v36 = vrot.slane %v754_v53, %v788_v35 }
 0x24a   :  { %1482 = vmatprep.subr.bf16.mxu0 %v4042_v41  ;;  %1523 = vmatprep.subr.bf16.mxu1 %v4045_v42 }
 0x24d   :  { %1483 = vmatpush1.bf16.msra.mxu0 %v4040_v43  ;;  %1524 = vmatpush1.bf16.msra.mxu1 %v4043_v26 }
 0x24e   :  { %1484 = vmatprep.subr.bf16.mxu0 %v4048_v44  ;;  %1525 = vmatprep.subr.bf16.mxu1 %v4051_v45 }
 0x251   :  { %1485 = vmatpush1.bf16.msra.mxu0 %v4046_v46  ;;  %1526 = vmatpush1.bf16.msra.mxu1 %v4049_v47 }
 0x254   :  { %1503 = vmatmul.mubr.bf16.vlgmr.msra.gmra.mrb[40].mxu0 %v4511_v49  ;;  %1544 = vmatmul.mubr.bf16.vlgmr.msra.gmra.mrb[40].mxu1 %v4511_v49  ;;  %v772_v49 = vsub.s32 3, %v4705_v50 }
 0x255   :  { %2067 = vmatprep.mubr.bf16.mxu1 %v4111_v25  ;;  %3814 = vmatprep.mubr.msk.f32.mxu0 %vm1841_vm7, %v4737_v23 }
 0x256   :  { %v773_v60 = vrot.slane %v754_v53, %v772_v49 }
 0x2e7   :  { %v1340_v61 = vpop.f32.mrb[32].mxu0  ;;  %v1381_v62 = vpop.f32.mrb[32].mxu1 }
 0x2e8   :  { %v1341_v63 = vadd.f32 %v1340_v61, %v761_v56  ;;  %v1382_v0 = vadd.f32 %v1381_v62, %v769_v57  ;;  %v1342_v1 = vpop.f32.mrb[33].mxu0  ;;  %v1383_v3 = vpop.f32.mrb[33].mxu1 }
 0x2e9   :  { %v1343_v4 = vadd.f32 %v1342_v1, %v765_v58  ;;  %v1384_v7 = vadd.f32 %v1383_v3, %v773_v60  ;;  %v1344_v8 = vpop.f32.mrb[34].mxu0  ;;  %v1385_v9 = vpop.f32.mrb[34].mxu1  ;;  %v755_v1 = vld [vmem:[%s5265_s7 + $0x8] sm:$0xf] }
 0x2ea   :  { %v1345_v10 = vpop.f32.mrb[35].mxu0  ;;  %v1386_v11 = vpop.f32.mrb[35].mxu1  ;;  %v801_v8 = vrot.slane %v755_v1, %v768_v52  ;;  %v797_v9 = vrot.slane %v755_v1, %v764_v54 }
 0x2eb   :  { %v1564_v12 = vcombine.low %v1341_v63, %v1343_v4  ;;  %v1565_v13 = vcombine.low %v1382_v0, %v1384_v7  ;;  %v793_v7 = vrot.slane %v755_v1, %v4708_v51  ;;  %v805_v10 = vrot.slane %v755_v1, %v772_v49 }
 0x2ed   :  { %v1572_v14 = vrot.slane %v1564_v12, %v4724_v5  ;;  %v1579_v15 = vrot.slane %v1565_v13, %v4724_v5 }
 0x2ef   :  { %v1580_v16 = vcombine.low %v1572_v14, %v1579_v15 }
 0x2f1   :  { %1618 = vst [vmem:[#allocation2] sm:$0xff] %v1580_v16 }
 0x2f8   :  { %v4730_v19 = vld [vmem:[#allocation2] sm:$0x1]  ;;  %v4735_v21 = vld [vmem:[#allocation2 + $0x2] sm:$0x1] }
 0x2f9   :  { %v1659_v20 = vrot.slane %v4730_v19, %v4708_v51  ;;  %v4749_v29 = vrot.slane %v4735_v21, %v4708_v51 }
 0x2fb   :  { %1830 = vrot.lane.b32.xlu1 %v1659_v20, %s4114_s24  ;;  %1660 = vrot.lane.b32.xlu0 %v1659_v20, %s4115_s25 }
 0x2ff   :  { %2109 = vrot.lane.b32.xlu1 %v4749_v29, %s4115_s25  ;;  %1663 = vrot.lane.b32.xlu0 %v1659_v20, %s4116_s26 }
 0x307   :  { %v1422_v40 = vpop.f32.mrb[36].mxu0  ;;  %v1463_v41 = vpop.f32.mrb[36].mxu1 }
 0x308   :  { %v1423_v42 = vadd.f32 %v1422_v40, %v777_v37  ;;  %v1464_v43 = vadd.f32 %v1463_v41, %v785_v38  ;;  %v1424_v26 = vpop.f32.mrb[37].mxu0  ;;  %v1465_v44 = vpop.f32.mrb[37].mxu1  ;;  %v1621_v40 = vld [vmem:[%s5259_s1] sm:$0x77] }
 0x309   :  { %v1425_v45 = vadd.f32 %v1424_v26, %v781_v39  ;;  %v1466_v46 = vadd.f32 %v1465_v44, %v789_v36  ;;  %v1426_v47 = vpop.f32.mrb[38].mxu0  ;;  %v1467_v55 = vpop.f32.mrb[38].mxu1  ;;  %v4117_v36 = vmov 3   ;;  %v1625_v41 = vcombine.high %v1621_v40, %v1621_v40 }
 0x30a   :  { %v1427_v2 = vpop.f32.mrb[39].mxu0  ;;  %v1468_v56 = vpop.f32.mrb[39].mxu1  ;;  %3896 = vset.pattern.permute.xlu0 %v4117_v36  ;;  %3897 = vset.pattern.permute.xlu1 %v4117_v36  ;;  %v1629_v55 = vpack.c.bf16 %v1621_v40, %v1621_v40 }
 0x30b   :  { %v1581_v57 = vcombine.low %v1423_v42, %v1425_v45  ;;  %v1582_v58 = vcombine.low %v1464_v43, %v1466_v46  ;;  %v1630_v43 = vpack.c.bf16 %v1625_v41, %v1625_v41 }
 0x30d   :  { %v1589_v59 = vrot.slane %v1581_v57, %v4724_v5  ;;  %v1596_v60 = vrot.slane %v1582_v58, %v4724_v5  ;;  %v4847_v2 = vand.u32 %v1630_v43, %v4178_v6  ;;  %v4854_v57 = vand.u32 %v1629_v55, %v4178_v6 }
 0x30f   :  { %v1597_v61 = vcombine.low %v1589_v59, %v1596_v60 }
 0x311   :  { %1619 = vst [vmem:[#allocation2 + $0x8] sm:$0xff] %v1597_v61 }
 0x318   :  { %v4764_v53 = vld [vmem:[#allocation2 + $0xa] ss:$0 sm:$0xff]  ;;  %v4766_v62 = vld [vmem:[#allocation2 + $0xe] ss:$0 sm:$0xff]  ;;  %v4776_v63 = vld [vmem:[#allocation2 + $0x8] sm:$0x1] }
 0x319   :  { %1696 = vrot.lane.b32.xlu1 %v4764_v53, %s4115_s25  ;;  %1725 = vrot.lane.b32.xlu0 %v4766_v62, %s4115_s25  ;;  %v4778_v0 = vld [vmem:[#allocation2 + $0xc] sm:$0x1]  ;;  %v1680_v3 = vrot.slane %v4776_v63, %v4708_v51 }
 0x31a   :  { %v1709_v4 = vrot.slane %v4778_v0, %v4708_v51 }
 0x31d   :  { %1699 = vrot.lane.b32.xlu1 %v4764_v53, %s4116_s26  ;;  %1728 = vrot.lane.b32.xlu0 %v4766_v62, %s4116_s26 }
 0x321   :  { %1702 = vrot.lane.b32.xlu1 %v4764_v53, %s4114_s24  ;;  %1731 = vrot.lane.b32.xlu0 %v4766_v62, %s4114_s24 }
 0x325   :  { %1681 = vrot.lane.b32.xlu1 %v1680_v3, %s4115_s25  ;;  %1710 = vrot.lane.b32.xlu0 %v1709_v4, %s4115_s25 }
 0x327   :  { %v1504_v11 = vpop.f32.mrb[40].mxu0  ;;  %v1545_v12 = vpop.f32.mrb[40].mxu1 }
 0x328   :  { %v1505_v13 = vadd.f32 %v1504_v11, %v793_v7  ;;  %v1546_v14 = vadd.f32 %v1545_v12, %v801_v8  ;;  %v1506_v15 = vpop.f32.mrb[41].mxu0  ;;  %v1547_v16 = vpop.f32.mrb[41].mxu1 }
 0x329   :  { %v1507_v17 = vadd.f32 %v1506_v15, %v797_v9  ;;  %v1548_v18 = vadd.f32 %v1547_v16, %v805_v10  ;;  %v1508_v20 = vpop.f32.mrb[42].mxu0  ;;  %v1549_v52 = vpop.f32.mrb[42].mxu1  ;;  %1684 = vrot.lane.b32.xlu1 %v1680_v3, %s4116_s26  ;;  %1713 = vrot.lane.b32.xlu0 %v1709_v4, %s4116_s26 }
 0x32a   :  { %v1509_v22 = vpop.f32.mrb[43].mxu0  ;;  %v1550_v27 = vpop.f32.mrb[43].mxu1 }
 0x32b   :  { %v1598_v54 = vcombine.low %v1505_v13, %v1507_v17  ;;  %v1599_v28 = vcombine.low %v1546_v14, %v1548_v18 }
 0x32d   :  { %v1606_v49 = vrot.slane %v1598_v54, %v4724_v5  ;;  %v1613_v32 = vrot.slane %v1599_v28, %v4724_v5  ;;  %1687 = vrot.lane.b32.xlu1 %v1680_v3, %s4114_s24  ;;  %1716 = vrot.lane.b32.xlu0 %v1709_v4, %s4114_s24 }
 0x32f   :  { %v1614_v33 = vcombine.low %v1606_v49, %v1613_v32  ;;  %v1622_v49 = vld [vmem:[%s5259_s1 + $0x8] sm:$0x77]  ;;  %s4121_s1 = smov [#allocation3]  }
 0x330   :  { %v1626_v32 = vcombine.high %v1622_v49, %v1622_v49  ;;  %s3467_s10 = sshll.u32 %s4121_s1, 4  ;;  %s3468_s10 = int_to_ptr.vmem [resolvable:$true] %s3467_s10 }
 0x331   :  { %1620 = vst [vmem:[#allocation2 + $0x10] sm:$0xff] %v1614_v33  ;;  %s4086_s2 = scalar_lea.vmem %s3468_s10, 128  ;;  %p4091_p1 = scmp.lt.s32.totalorder %s3468_s10, %s3468_s10 }
 0x332   :  { %v1632_v33 = vpack.c.bf16 %v1626_v32, %v1626_v32  ;;  %p4087_p0 = scmp.ne.s32.totalorder %s3468_s10, %s4086_s2  ;;  %p4092_p2 = scmp.lt.s32.totalorder %s4086_s2, %s4086_s2 }
 0x334   :  { %p4093_p3 = por %p4092_p2, %p4091_p1 }
 0x336   :  { %p4094_p4 = pnand %p4093_p3, %p4087_p0 }
 0x338   :  { %v4806_v34 = vld [vmem:[#allocation2 + $0x16] ss:$0 sm:$0xff]  ;;  %v4808_v35 = vld [vmem:[#allocation2 + $0x12] ss:$0 sm:$0xff]  ;;  %v4814_v37 = vld [vmem:[#allocation2 + $0x14] sm:$0x1] }
 0x339   :  { %1802 = vrot.lane.b32.xlu1 %v4806_v34, %s4115_s25  ;;  %1773 = vrot.lane.b32.xlu0 %v4808_v35, %s4115_s25  ;;  %v4816_v38 = vld [vmem:[#allocation2 + $0x10] sm:$0x1]  ;;  %v1786_v5 = vrot.slane %v4814_v37, %v4708_v51 }
 0x33a   :  { %v1757_v39 = vrot.slane %v4816_v38, %v4708_v51 }
 0x33d   :  { %1805 = vrot.lane.b32.xlu1 %v4806_v34, %s4116_s26  ;;  %1776 = vrot.lane.b32.xlu0 %v4808_v35, %s4116_s26 }
 0x341   :  { %1787 = vrot.lane.b32.xlu1 %v1786_v5, %s4115_s25  ;;  %1758 = vrot.lane.b32.xlu0 %v1757_v39, %s4115_s25 }
 0x345   :  { %1790 = vrot.lane.b32.xlu1 %v1786_v5, %s4116_s26  ;;  %1761 = vrot.lane.b32.xlu0 %v1757_v39, %s4116_s26 }
 0x349   :  { %1793 = vrot.lane.b32.xlu1 %v1786_v5, %s4114_s24  ;;  %1764 = vrot.lane.b32.xlu0 %v1757_v39, %s4114_s24  ;;  %v1631_v5 = vpack.c.bf16 %v1622_v49, %v1622_v49  ;;  %v4899_v39 = vand.u32 %v1632_v33, %v4178_v6 }
 0x34b   :  { %v4902_v40 = vand.u32 %v1631_v5, %v4178_v6  ;;  %2035 = vmatprep.subr.bf16.mxu1 %v4899_v39 }
 0x34d   :  { %1808 = vrot.lane.b32.xlu1 %v4806_v34, %s4114_s24  ;;  %1779 = vrot.lane.b32.xlu0 %v4808_v35, %s4114_s24 }
 0x34e   :  { %2036 = vmatpush1.bf16.msra.mxu1 %v4902_v40 }
 0x351   :  { %2116 = vrot.lane.b32.xlu0 %v4749_v29, %s4116_s26 }
 0x36d   :  { %v1661_v42 = vpop.permute.xlu0 %1660  ;;  %v1831_v45 = vpop.permute.xlu1 %1830 }
 0x36e   :  { %v1666_v26 = vsel %vm137_vm0, %v4730_v19, %v1661_v42 }
 0x371   :  { %v1664_v44 = vpop.permute.xlu0 %1663  ;;  %v4865_v19 = vpop.permute.xlu1 %2109 }
 0x372   :  { %v1667_v46 = vsel %vm138_vm1, %v1666_v26, %v1664_v44 }
 0x373   :  { %v1833_v47 = vmul.f32 %v1831_v45, %v1667_v46 }
 0x375   :  { %v1840_v56 = vsel %vm1736_vm10, %v1833_v47, %v4749_v29 }
 0x376   :  { %3812 = vmatprep.subr.msk.mxu0 %vm1841_vm7, %v1840_v56 }
 0x377   :  { %3813 = vmatpush3.xpose.msk.msra.mxu0 %vm1841_vm7, %v1840_v56 }
 0x378   :  { %1982 = vmatprep.subr.bf16.mxu0 %v4847_v2 }
 0x37a   :  { %3815 = vmatmul.mubr.msk.f32.vlgmr.msra.gmra.mrb[44].mxu0 %vm1841_vm7, %v4739_v24 }
 0x37b   :  { %3817 = vmatprep.mubr.msk.f32.mxu0 %vm1841_vm7, %v4751_v30  ;;  %1983 = vmatpush1.bf16.msra.mxu0 %v4854_v57 }
 0x37e   :  { %3818 = vmatmul.mubr.msk.f32.gmra.mrb[46].mxu0 %vm1841_vm7, %v4753_v31 }
 0x37f   :  { %2014 = vmatprep.mubr.bf16.mxu0 %v4111_v25 }
 0x38b   :  { %v1697_v29 = vpop.permute.xlu1 %1696  ;;  %v1726_v58 = vpop.permute.xlu0 %1725 }
 0x38f   :  { %v1700_v59 = vpop.permute.xlu1 %1699  ;;  %v1729_v60 = vpop.permute.xlu0 %1728 }
 0x393   :  { %v1703_v61 = vpop.permute.xlu1 %1702  ;;  %v1732_v1 = vpop.permute.xlu0 %1731 }
 0x397   :  { %v1682_v3 = vpop.permute.xlu1 %1681  ;;  %v1711_v4 = vpop.permute.xlu0 %1710 }
 0x398   :  { %v1734_v9 = vsel %vm137_vm0, %v4776_v63, %v1682_v3  ;;  %v1746_v10 = vsel %vm137_vm0, %v4778_v0, %v1711_v4 }
 0x39b   :  { %v1685_v7 = vpop.permute.xlu1 %1684  ;;  %v1714_v8 = vpop.permute.xlu0 %1713 }
 0x39c   :  { %v1735_v11 = vsel %vm138_vm1, %v1734_v9, %v1685_v7  ;;  %v1747_v12 = vsel %vm138_vm1, %v1746_v10, %v1714_v8 }
 0x39f   :  { %v1688_v13 = vpop.permute.xlu1 %1687  ;;  %v1717_v14 = vpop.permute.xlu0 %1716 }
 0x3a0   :  { %v1737_v15 = vsel %vm1736_vm10, %v1735_v11, %v1688_v13  ;;  %v1748_v16 = vsel %vm1736_vm10, %v1747_v12, %v1717_v14 }
 0x3a1   :  { %v1739_v17 = vsel %vm1738_vm11, %v1737_v15, %v4764_v53  ;;  %v1749_v63 = vsel %vm1738_vm11, %v1748_v16, %v4766_v62 }
 0x3a2   :  { %v1741_v0 = vsel %vm1740_vm12, %v1739_v17, %v1697_v29  ;;  %v1750_v18 = vsel %vm1740_vm12, %v1749_v63, %v1726_v58 }
 0x3a3   :  { %v1743_v20 = vsel %vm1742_vm13, %v1741_v0, %v1700_v59  ;;  %v1751_v52 = vsel %vm1742_vm13, %v1750_v18, %v1729_v60  ;;  %v4118_v0 = vmov 32  }
 0x3a4   :  { %v1745_v22 = vsel %vm1744_vm14, %v1743_v20, %v1703_v61  ;;  %v1752_v27 = vsel %vm1744_vm14, %v1751_v52, %v1732_v1 }
 0x3a5   :  { %v2112_v54 = vmul.f32 %v4865_v19, %v1745_v22  ;;  %v2113_v53 = vmul.f32 %v4865_v19, %v1752_v27 }
 0x3a7   :  { %v3860_v28 = vpack.c.bf16 %v2113_v53, %v2112_v54 }
 0x3a9   :  { %3862 = vmatprep.subr.msk.bf16.mxu0 %vm4889_vm15, %v3860_v28 }
 0x3ab   :  { %v1803_v41 = vpop.permute.xlu1 %1802  ;;  %v1774_v42 = vpop.permute.xlu0 %1773 }
 0x3af   :  { %v1806_v43 = vpop.permute.xlu1 %1805  ;;  %v1777_v26 = vpop.permute.xlu0 %1776 }
 0x3b3   :  { %v1788_v44 = vpop.permute.xlu1 %1787  ;;  %v1759_v45 = vpop.permute.xlu0 %1758 }
 0x3b4   :  { %v1818_v29 = vsel %vm137_vm0, %v4814_v37, %v1788_v44  ;;  %v1811_v6 = vsel %vm137_vm0, %v4816_v38, %v1759_v45 }
 0x3b7   :  { %v1791_v46 = vpop.permute.xlu1 %1790  ;;  %v1762_v47 = vpop.permute.xlu0 %1761 }
 0x3b8   :  { %v1819_v58 = vsel %vm138_vm1, %v1818_v29, %v1791_v46  ;;  %v1812_v59 = vsel %vm138_vm1, %v1811_v6, %v1762_v47 }
 0x3bb   :  { %v1794_v55 = vpop.permute.xlu1 %1793  ;;  %v1765_v56 = vpop.permute.xlu0 %1764 }
 0x3bc   :  { %v1820_v60 = vsel %vm1736_vm10, %v1819_v58, %v1794_v55  ;;  %v1813_v61 = vsel %vm1736_vm10, %v1812_v59, %v1765_v56 }
 0x3bd   :  { %v1821_v1 = vsel %vm1738_vm11, %v1820_v60, %v4806_v34  ;;  %v1814_v3 = vsel %vm1738_vm11, %v1813_v61, %v4808_v35 }
 0x3be   :  { %v1822_v4 = vsel %vm1740_vm12, %v1821_v1, %v1803_v41  ;;  %v1815_v37 = vsel %vm1740_vm12, %v1814_v3, %v1774_v42 }
 0x3bf   :  { %v1823_v38 = vsel %vm1742_vm13, %v1822_v4, %v1806_v43  ;;  %v1809_v7 = vpop.permute.xlu1 %1808  ;;  %v1816_v8 = vsel %vm1742_vm13, %v1815_v37, %v1777_v26  ;;  %v1780_v9 = vpop.permute.xlu0 %1779 }
 0x3c0   :  { %v1824_v10 = vsel %vm1744_vm14, %v1823_v38, %v1809_v7  ;;  %v1817_v11 = vsel %vm1744_vm14, %v1816_v8, %v1780_v9 }
 0x3c1   :  { %v2115_v12 = vmul.f32 %v4865_v19, %v1824_v10  ;;  %v2114_v34 = vmul.f32 %v4865_v19, %v1817_v11 }
 0x3c3   :  { %v3866_v15 = vpack.c.bf16 %v2115_v12, %v2114_v34  ;;  %v2117_v19 = vpop.permute.xlu0 %2116 }
 0x44d   :  { %v3816_v13 = vpop.f32.mrb[44].mxu0 }
 0x44e   :  { %1951 = vperm.xlu0 %3896, %v3816_v13   ;;  %v1923_v35 = vpop.f32.mrb[45].mxu0 }
 0x44f   :  { %v1942_v14 = vpack.c.bf16 %v3816_v13, %v1923_v35  ;;  %1946 = vperm.xlu1 %3897, %v1923_v35  }
 0x451   :  { %v3819_v16 = vpop.f32.mrb[46].mxu0  ;;  %3618 = vmatmul.mubr.msk.bf16.vlgmr.msra.gmra.mrb[48].mxu0 %vm88_vm2, %v1942_v14  ;;  %3620 = vmatmul.mubr.msk.bf16.vlgmr.msra.gmra.mrb[44].mxu1 %vm88_vm2, %v1942_v14 }
 0x452   :  { %3865 = vmatpush3.bf16.xpose.msk.msra.mxu0 %vm4889_vm15, %v3860_v28  ;;  %v1933_v17 = vpop.f32.mrb[47].mxu0  ;;  %2024 = vmatprep.mubr.bf16.mxu0 %v4111_v25 }
 0x453   :  { %v1943_v63 = vpack.c.bf16 %v3819_v16, %v1933_v17  ;;  %3868 = vmatprep.subr.msk.bf16.mxu0 %vm4889_vm15, %v3866_v15  ;;  %1956 = vperm.xlu1 %3897, %v1933_v17  }
 0x454   :  { %2077 = vmatprep.mubr.bf16.mxu1 %v4111_v25  ;;  %3899 = vset.pattern.permute.xlu0 %v4118_v0 }
 0x457   :  { %1961 = vperm.xlu1 %3897, %v3819_v16  }
 0x459   :  { %3619 = vmatmul.mubr.msk.bf16.gmra.mrb[52].mxu0 %vm88_vm2, %v1943_v63  ;;  %3621 = vmatmul.mubr.msk.bf16.gmra.mrb[48].mxu1 %vm88_vm2, %v1943_v63 }
 0x45a   :  { %3871 = vmatpush3.bf16.xpose.msk.msra.mxu0 %vm4889_vm15, %v3866_v15  ;;  %3830 = vmatprep.mubr.msk.f32.mxu0 %vm1841_vm7, %v4737_v23 }
 0x45b   :  { %3828 = vmatprep.subr.msk.mxu0 %vm1841_vm7, %v2117_v19  ;;  %2285 = vmatprep.mubr.bf16.mxu1 %v4111_v25 }
 0x45c   :  { %3898 = vset.pattern.permute.xlu1 %v4118_v0 }
 0x462   :  { %3829 = vmatpush3.xpose.msk.msra.mxu0 %vm1841_vm7, %v2117_v19 }
 0x465   :  { %3831 = vmatmul.mubr.msk.f32.vlgmr.msra.gmra.mrb[56].mxu0 %vm1841_vm7, %v4739_v24 }
 0x466   :  { %3833 = vmatprep.mubr.msk.f32.mxu0 %vm1841_vm7, %v4751_v30 }
 0x469   :  { %3834 = vmatmul.mubr.msk.f32.gmra.mrb[58].mxu0 %vm1841_vm7, %v4753_v31 }
 0x46a   :  { %2338 = vmatprep.mubr.bf16.mxu0 %v4111_v25 }
 0x4cd   :  { %v1952_v20 = vpop.permute.xlu0 %1951 }
 0x4ce   :  { %v1947_v18 = vpop.permute.xlu1 %1946 }
 0x4d2   :  { %v1957_v52 = vpop.permute.xlu1 %1956 }
 0x4d6   :  { %v1962_v61 = vpop.permute.xlu1 %1961 }
 0x524   :  { %v2016_v22 = vpop.f32.mrb[48].mxu0  ;;  %v2069_v27 = vpop.f32.mrb[44].mxu1 }
 0x525   :  { %v2017_v54 = vadd.f32 %v2016_v22, %v1947_v18  ;;  %v2070_v53 = vadd.f32 %v2069_v27, %v1947_v18  ;;  %v2018_v28 = vpop.f32.mrb[49].mxu0  ;;  %v2071_v49 = vpop.f32.mrb[45].mxu1 }
 0x526   :  { %v2019_v32 = vadd.f32 %v2018_v28, %v1947_v18  ;;  %v2072_v33 = vadd.f32 %v2071_v49, %v1947_v18  ;;  %v2020_v5 = vpop.f32.mrb[50].mxu0  ;;  %v2073_v41 = vpop.f32.mrb[46].mxu1 }
 0x527   :  { %v2021_v42 = vadd.f32 %v2020_v5, %v1952_v20  ;;  %v2074_v43 = vadd.f32 %v2073_v41, %v1952_v20  ;;  %v2022_v26 = vpop.f32.mrb[51].mxu0  ;;  %v2075_v44 = vpop.f32.mrb[47].mxu1  ;;  %v2088_v47 = vmax.f32 %v2017_v54, 0.0  ;;  %v2090_v55 = vmax.f32 %v2070_v53, 0.0 }
 0x528   :  { %v2023_v45 = vadd.f32 %v2022_v26, %v1952_v20  ;;  %v2076_v46 = vadd.f32 %v2075_v44, %v1952_v20  ;;  %v2089_v6 = vmax.f32 %v2019_v32, 0.0  ;;  %v2091_v58 = vmax.f32 %v2072_v33, 0.0 }
 0x529   :  { %v2092_v56 = vmax.f32 %v2021_v42, 0.0  ;;  %v2094_v29 = vmax.f32 %v2074_v43, 0.0 }
 0x52a   :  { %v2093_v59 = vmax.f32 %v2023_v45, 0.0  ;;  %v2095_v60 = vmax.f32 %v2076_v46, 0.0  ;;  %v4954_v45 = vld [vmem:[#allocation2 + $0x1] sm:$0x1] }
 0x52b   :  { %v2219_v1 = vpack.c.bf16 %v2092_v56, %v2088_v47  ;;  %v2221_v3 = vpack.c.bf16 %v2094_v29, %v2090_v55  ;;  %v2375_v47 = vpack.c.bf16 %v4735_v21, %v4735_v21  ;;  %v2580_v55 = vrot.slane %v4954_v45, %v4708_v51  ;;  %v4968_v56 = vld [vmem:[#allocation2 + $0xd] sm:$0x1]  ;;  %v4970_v29 = vld [vmem:[#allocation2 + $0x9] sm:$0x1] }
 0x52c   :  { %v2220_v4 = vpack.c.bf16 %v2093_v59, %v2089_v6  ;;  %v2222_v37 = vpack.c.bf16 %v2095_v60, %v2091_v58  ;;  %v2026_v38 = vpop.f32.mrb[52].mxu0  ;;  %v2079_v7 = vpop.f32.mrb[48].mxu1  ;;  %v2630_v21 = vrot.slane %v4968_v56, %v4708_v51  ;;  %v4986_v6 = vld [vmem:[#allocation2 + $0xf] ss:$0 sm:$0xff]  ;;  %v4988_v58 = vld [vmem:[#allocation2 + $0xb] ss:$0 sm:$0xff] }
 0x52d   :  { %v2027_v8 = vadd.f32 %v2026_v38, %v1957_v52  ;;  %v2080_v9 = vadd.f32 %v2079_v7, %v1957_v52  ;;  %v2028_v10 = vpop.f32.mrb[53].mxu0  ;;  %v2081_v11 = vpop.f32.mrb[49].mxu1  ;;  %v4998_v59 = vld [vmem:[#allocation2 + $0x11] sm:$0x1]  ;;  %v5000_v60 = vld [vmem:[#allocation2 + $0x3] sm:$0x1] }
 0x52e   :  { %v2029_v12 = vadd.f32 %v2028_v10, %v1957_v52  ;;  %v2082_v34 = vadd.f32 %v2081_v11, %v1957_v52  ;;  %v2030_v13 = vpop.f32.mrb[54].mxu0  ;;  %v2083_v35 = vpop.f32.mrb[50].mxu1  ;;  %2253 = vmatprep.subr.bf16.mxu1 %v2220_v4  ;;  %2306 = vmatprep.subr.bf16.mxu0 %v2222_v37  ;;  %v5023_v37 = vld [vmem:[#allocation2 + $0x13] ss:$0 sm:$0xff]  ;;  %v5028_v38 = vld [vmem:[#allocation2 + $0x17] ss:$0 sm:$0xff] }
 0x52f   :  { %v2031_v14 = vadd.f32 %v2030_v13, %v1962_v61  ;;  %v2084_v15 = vadd.f32 %v2083_v35, %v1962_v61  ;;  %v2032_v16 = vpop.f32.mrb[55].mxu0  ;;  %v2085_v17 = vpop.f32.mrb[51].mxu1  ;;  %2254 = vmatpush1.bf16.msra.mxu1 %v2219_v1  ;;  %2307 = vmatpush1.bf16.msra.mxu0 %v2221_v3  ;;  %v2096_v18 = vmax.f32 %v2027_v8, 0.0  ;;  %v2098_v20 = vmax.f32 %v2080_v9, 0.0  ;;  %v5012_v3 = vld [vmem:[#allocation2 + $0x15] sm:$0x1] }
 0x530   :  { %v2033_v63 = vadd.f32 %v2032_v16, %v1962_v61  ;;  %v2086_v19 = vadd.f32 %v2085_v17, %v1962_v61  ;;  %v2097_v54 = vmax.f32 %v2029_v12, 0.0  ;;  %v2099_v53 = vmax.f32 %v2082_v34, 0.0 }
 0x531   :  { %v2100_v22 = vmax.f32 %v2031_v14, 0.0  ;;  %v2102_v27 = vmax.f32 %v2084_v15, 0.0  ;;  %v2673_v61 = vrot.slane %v4998_v59, %v4708_v51  ;;  %v5010_v1 = vrot.slane %v5000_v60, %v4708_v51 }
 0x532   :  { %v2101_v28 = vmax.f32 %v2033_v63, 0.0  ;;  %v2103_v52 = vmax.f32 %v2086_v19, 0.0  ;;  %v2702_v4 = vrot.slane %v5012_v3, %v4708_v51 }
 0x533   :  { %v2223_v49 = vpack.c.bf16 %v2100_v22, %v2096_v18  ;;  %v2225_v32 = vpack.c.bf16 %v2102_v27, %v2098_v20 }
 0x534   :  { %v2224_v33 = vpack.c.bf16 %v2101_v28, %v2097_v54  ;;  %v2226_v5 = vpack.c.bf16 %v2103_v52, %v2099_v53 }
 0x536   :  { %2255 = vmatprep.subr.bf16.mxu1 %v2224_v33  ;;  %2308 = vmatprep.subr.bf16.mxu0 %v2226_v5 }
 0x537   :  { %2256 = vmatpush1.bf16.msra.mxu1 %v2223_v49  ;;  %2309 = vmatpush1.bf16.msra.mxu0 %v2225_v32 }
 0x538   :  { %v3832_v41 = vpop.f32.mrb[56].mxu0 }
 0x539   :  { %2234 = vperm.xlu1 %3898, %v3832_v41   ;;  %v2198_v42 = vpop.f32.mrb[57].mxu0 }
 0x53a   :  { %v2217_v43 = vpack.c.bf16 %v3832_v41, %v2198_v42  ;;  %2229 = vperm.xlu0 %3899, %v2198_v42  }
 0x53c   :  { %v3835_v26 = vpop.f32.mrb[58].mxu0  ;;  %3631 = vmatmul.mubr.msk.bf16.vlgmr.msra.gmra.mrb[52].mxu1 %vm1841_vm7, %v2217_v43  ;;  %3633 = vmatmul.mubr.msk.bf16.vlgmr.msra.gmra.mrb[60].mxu0 %vm1841_vm7, %v2217_v43 }
 0x53d   :  { %v2208_v44 = vpop.f32.mrb[59].mxu0  ;;  %2295 = vmatprep.mubr.bf16.mxu1 %v4111_v25  ;;  %2348 = vmatprep.mubr.bf16.mxu0 %v4111_v25 }
 0x53e   :  { %v2218_v46 = vpack.c.bf16 %v3835_v26, %v2208_v44  ;;  %2244 = vperm.xlu0 %3899, %v3835_v26   ;;  %2239 = vperm.xlu1 %3898, %v2208_v44  }
 0x542   :  { %2385 = vrot.lane.b32.xlu0 %v2375_v47, %s4114_s24  ;;  %2581 = vrot.lane.b32.xlu1 %v2580_v55, %s4115_s25 }
 0x543   :  { %3900 = vset.pattern.permute.xlu0 %v4117_v36  ;;  %3901 = vset.pattern.permute.xlu1 %v4117_v36  ;;  %v2601_v36 = vrot.slane %v4970_v29, %v4708_v51 }
 0x544   :  { %3632 = vmatmul.mubr.msk.bf16.gmra.mrb[56].mxu1 %vm1841_vm7, %v2218_v46  ;;  %3634 = vmatmul.mubr.msk.bf16.gmra.mrb[64].mxu0 %vm1841_vm7, %v2218_v46 }
 0x545   :  { %2422 = vmatprep.mubr.bf16.mxu1 %v4111_v25  ;;  %2463 = vmatprep.mubr.bf16.mxu0 %v4111_v25 }
 0x546   :  { %2746 = vrot.lane.b32.xlu0 %v2580_v55, %s4114_s24  ;;  %2584 = vrot.lane.b32.xlu1 %v2580_v55, %s4116_s26 }
 0x54a   :  { %2631 = vrot.lane.b32.xlu0 %v2630_v21, %s4115_s25  ;;  %2602 = vrot.lane.b32.xlu1 %v2601_v36, %s4115_s25 }
 0x54e   :  { %2634 = vrot.lane.b32.xlu0 %v2630_v21, %s4116_s26  ;;  %2605 = vrot.lane.b32.xlu1 %v2601_v36, %s4116_s26 }
 0x552   :  { %2637 = vrot.lane.b32.xlu0 %v2630_v21, %s4114_s24  ;;  %2608 = vrot.lane.b32.xlu1 %v2601_v36, %s4114_s24 }
 0x556   :  { %2646 = vrot.lane.b32.xlu0 %v4986_v6, %s4115_s25  ;;  %2617 = vrot.lane.b32.xlu1 %v4988_v58, %s4115_s25 }
 0x55a   :  { %2649 = vrot.lane.b32.xlu0 %v4986_v6, %s4116_s26  ;;  %2620 = vrot.lane.b32.xlu1 %v4988_v58, %s4116_s26 }
 0x55e   :  { %2652 = vrot.lane.b32.xlu0 %v4986_v6, %s4114_s24  ;;  %2623 = vrot.lane.b32.xlu1 %v4988_v58, %s4114_s24 }
 0x562   :  { %2674 = vrot.lane.b32.xlu0 %v2673_v61, %s4115_s25  ;;  %3000 = vrot.lane.b32.xlu1 %v5010_v1, %s4115_s25 }
 0x566   :  { %2677 = vrot.lane.b32.xlu0 %v2673_v61, %s4116_s26  ;;  %2703 = vrot.lane.b32.xlu1 %v2702_v4, %s4115_s25 }
 0x56a   :  { %2680 = vrot.lane.b32.xlu0 %v2673_v61, %s4114_s24  ;;  %2706 = vrot.lane.b32.xlu1 %v2702_v4, %s4116_s26 }
 0x56e   :  { %2689 = vrot.lane.b32.xlu0 %v5023_v37, %s4115_s25  ;;  %2709 = vrot.lane.b32.xlu1 %v2702_v4, %s4114_s24 }
 0x572   :  { %2692 = vrot.lane.b32.xlu0 %v5023_v37, %s4116_s26  ;;  %2718 = vrot.lane.b32.xlu1 %v5028_v38, %s4115_s25 }
 0x576   :  { %2695 = vrot.lane.b32.xlu0 %v5023_v37, %s4114_s24  ;;  %2721 = vrot.lane.b32.xlu1 %v5028_v38, %s4116_s26 }
 0x57a   :  { %3007 = vrot.lane.b32.xlu0 %v5010_v1, %s4116_s26  ;;  %2724 = vrot.lane.b32.xlu1 %v5028_v38, %s4114_s24 }
 0x5b8   :  { %v2235_v7 = vpop.permute.xlu1 %2234 }
 0x5b9   :  { %v2230_v8 = vpop.permute.xlu0 %2229 }
 0x5bd   :  { %v2240_v9 = vpop.permute.xlu1 %2239  ;;  %v5042_v10 = vpop.permute.xlu0 %2244 }
 0x5c1   :  { %v2582_v11 = vpop.permute.xlu1 %2581  ;;  %v5044_v12 = vpop.permute.xlu0 %2385 }
 0x5c2   :  { %v2587_v41 = vsel %vm137_vm0, %v4954_v45, %v2582_v11 }
 0x5c5   :  { %v2585_v34 = vpop.permute.xlu1 %2584  ;;  %v2747_v13 = vpop.permute.xlu0 %2746 }
 0x5c6   :  { %v2588_v46 = vsel %vm138_vm1, %v2587_v41, %v2585_v34 }
 0x5c9   :  { %v2603_v35 = vpop.permute.xlu1 %2602  ;;  %v2632_v14 = vpop.permute.xlu0 %2631 }
 0x5ca   :  { %v2662_v45 = vsel %vm137_vm0, %v4968_v56, %v2632_v14 }
 0x5cd   :  { %v2606_v15 = vpop.permute.xlu1 %2605  ;;  %v2635_v16 = vpop.permute.xlu0 %2634 }
 0x5d1   :  { %v2609_v17 = vpop.permute.xlu1 %2608  ;;  %v2638_v63 = vpop.permute.xlu0 %2637 }
 0x5d5   :  { %v5046_v19 = vpop.permute.xlu1 %2617  ;;  %v5048_v18 = vpop.permute.xlu0 %2646 }
 0x5d9   :  { %v5050_v20 = vpop.permute.xlu1 %2620  ;;  %v2650_v11 = vpop.permute.xlu0 %2649 }
 0x60f   :  { %v2287_v22 = vpop.f32.mrb[52].mxu1  ;;  %v2340_v27 = vpop.f32.mrb[60].mxu0 }
 0x610   :  { %v2288_v54 = vadd.f32 %v2287_v22, %v2230_v8  ;;  %v2341_v53 = vadd.f32 %v2340_v27, %v2230_v8  ;;  %v2289_v28 = vpop.f32.mrb[53].mxu1  ;;  %v2342_v52 = vpop.f32.mrb[61].mxu0 }
 0x611   :  { %v2290_v49 = vadd.f32 %v2289_v28, %v2230_v8  ;;  %v2343_v32 = vadd.f32 %v2342_v52, %v2230_v8  ;;  %v2291_v33 = vpop.f32.mrb[54].mxu1  ;;  %v2344_v5 = vpop.f32.mrb[62].mxu0  ;;  %v2655_v52 = vsel %vm137_vm0, %v4970_v29, %v2603_v35 }
 0x612   :  { %v2292_v42 = vadd.f32 %v2291_v33, %v2235_v7  ;;  %v2345_v43 = vadd.f32 %v2344_v5, %v2235_v7  ;;  %v2293_v26 = vpop.f32.mrb[55].mxu1  ;;  %v2346_v44 = vpop.f32.mrb[63].mxu0  ;;  %v2359_v21 = vmax.f32 %v2288_v54, 0.0  ;;  %v2361_v36 = vmax.f32 %v2341_v53, 0.0 }
 0x613   :  { %v2294_v47 = vadd.f32 %v2293_v26, %v2235_v7  ;;  %v2347_v55 = vadd.f32 %v2346_v44, %v2235_v7  ;;  %v2360_v22 = vmax.f32 %v2290_v49, 0.0  ;;  %v2362_v27 = vmax.f32 %v2343_v32, 0.0  ;;  %v2624_v33 = vpop.permute.xlu1 %2623 }
 0x614   :  { %v2363_v61 = vmax.f32 %v2292_v42, 0.0  ;;  %v2365_v4 = vmax.f32 %v2345_v43, 0.0  ;;  %v2656_v7 = vsel %vm138_vm1, %v2655_v52, %v2606_v15  ;;  %v2663_v54 = vsel %vm138_vm1, %v2662_v45, %v2635_v16 }
 0x615   :  { %v2364_v8 = vmax.f32 %v2294_v47, 0.0  ;;  %v2366_v28 = vmax.f32 %v2347_v55, 0.0  ;;  %v2657_v42 = vsel %vm1736_vm10, %v2656_v7, %v2609_v17  ;;  %v2664_v43 = vsel %vm1736_vm10, %v2663_v54, %v2638_v63 }
 0x616   :  { %v2376_v5 = vpack.c.bf16 %v2363_v61, %v2359_v21  ;;  %v2378_v34 = vpack.c.bf16 %v2365_v4, %v2361_v36  ;;  %v2749_v15 = vmul.f32 %v2747_v13, %v2588_v46  ;;  %v2658_v17 = vsel %vm1738_vm11, %v2657_v42, %v4988_v58 }
 0x617   :  { %v2377_v53 = vpack.c.bf16 %v2364_v8, %v2360_v22  ;;  %v2379_v41 = vpack.c.bf16 %v2366_v28, %v2362_v27  ;;  %v2297_v49 = vpop.f32.mrb[56].mxu1  ;;  %v2350_v32 = vpop.f32.mrb[64].mxu0  ;;  %v2665_v63 = vsel %vm1738_vm11, %v2664_v43, %v4986_v6 }
 0x618   :  { %v2298_v29 = vadd.f32 %v2297_v49, %v2240_v9  ;;  %v2351_v35 = vadd.f32 %v2350_v32, %v2240_v9  ;;  %v2299_v26 = vpop.f32.mrb[57].mxu1  ;;  %v2352_v56 = vpop.f32.mrb[65].mxu0  ;;  %v2666_v58 = vsel %vm1740_vm12, %v2665_v63, %v5048_v18  ;;  %v2756_v18 = vsel %vm1736_vm10, %v2749_v15, %v5010_v1 }
 0x619   :  { %v2300_v14 = vadd.f32 %v2299_v26, %v2240_v9  ;;  %v2353_v44 = vadd.f32 %v2352_v56, %v2240_v9  ;;  %v2301_v47 = vpop.f32.mrb[58].mxu1  ;;  %v2354_v55 = vpop.f32.mrb[66].mxu0  ;;  %2390 = vmatprep.subr.bf16.mxu1 %v2377_v53  ;;  %2431 = vmatprep.subr.bf16.mxu0 %v2379_v41  ;;  %v2667_v53 = vsel %vm1742_vm13, %v2666_v58, %v2650_v11 }
 0x61a   :  { %v2302_v16 = vadd.f32 %v2301_v47, %v5042_v10  ;;  %v2355_v21 = vadd.f32 %v2354_v55, %v5042_v10  ;;  %v2303_v36 = vpop.f32.mrb[59].mxu1  ;;  %v2356_v61 = vpop.f32.mrb[67].mxu0  ;;  %2391 = vmatpush1.bf16.msra.mxu1 %v2376_v5  ;;  %2432 = vmatpush1.bf16.msra.mxu0 %v2378_v34  ;;  %v2367_v22 = vmax.f32 %v2298_v29, 0.0  ;;  %v2369_v13 = vmax.f32 %v2351_v35, 0.0 }
 0x61b   :  { %v2304_v9 = vadd.f32 %v2303_v36, %v5042_v10  ;;  %v2357_v4 = vadd.f32 %v2356_v61, %v5042_v10  ;;  %v2653_v8 = vpop.permute.xlu0 %2652  ;;  %v2368_v28 = vmax.f32 %v2300_v14, 0.0  ;;  %v2370_v52 = vmax.f32 %v2353_v44, 0.0  ;;  %v5075_v6 = vpop.permute.xlu1 %3000 }
 0x61c   :  { %v2371_v46 = vmax.f32 %v2302_v16, 0.0  ;;  %v2373_v27 = vmax.f32 %v2355_v21, 0.0  ;;  %v2659_v34 = vsel %vm1740_vm12, %v2658_v17, %v5046_v19  ;;  %v2668_v42 = vsel %vm1744_vm14, %v2667_v53, %v2653_v8 }
 0x61d   :  { %v2372_v45 = vmax.f32 %v2304_v9, 0.0  ;;  %v2374_v5 = vmax.f32 %v2357_v4, 0.0  ;;  %v2660_v10 = vsel %vm1742_vm13, %v2659_v34, %v5050_v20  ;;  %v3004_v43 = vmul.f32 %v5075_v6, %v2668_v42 }
 0x61e   :  { %v2380_v7 = vpack.c.bf16 %v2371_v46, %v2367_v22  ;;  %v2382_v54 = vpack.c.bf16 %v2373_v27, %v2369_v13  ;;  %v2661_v32 = vsel %vm1744_vm14, %v2660_v10, %v2624_v33 }
 0x61f   :  { %v2381_v41 = vpack.c.bf16 %v2372_v45, %v2368_v28  ;;  %v2383_v49 = vpack.c.bf16 %v2374_v5, %v2370_v52  ;;  %v3003_v19 = vmul.f32 %v5075_v6, %v2661_v32 }
 0x621   :  { %2392 = vmatprep.subr.bf16.mxu1 %v2381_v41  ;;  %2433 = vmatprep.subr.bf16.mxu0 %v2383_v49  ;;  %v3872_v20 = vpack.c.bf16 %v3004_v43, %v3003_v19 }
 0x622   :  { %2393 = vmatpush1.bf16.msra.mxu1 %v2380_v7  ;;  %2434 = vmatpush1.bf16.msra.mxu0 %v2382_v54 }
 0x623   :  { %3836 = vmatprep.subr.msk.mxu1 %vm1841_vm7, %v2756_v18  ;;  %2873 = vmatprep.subr.bf16.mxu0 %v4847_v2  ;;  %v2704_v2 = vpop.permute.xlu1 %2703 }
 0x624   :  { %v2734_v26 = vsel %vm137_vm0, %v5012_v3, %v2704_v2 }
 0x625   :  { %3635 = vmatmul.mubr.msk.bf16.vlgmr.msra.gmra.mrb[60].mxu1 %vm1841_vm7, %v5044_v12  ;;  %3636 = vmatmul.mubr.msk.bf16.vlgmr.msra.gmra.mrb[68].mxu0 %vm1841_vm7, %v5044_v12 }
 0x626   :  { %2874 = vmatpush1.bf16.msra.mxu0 %v4854_v57  ;;  %3838 = vmatprep.mubr.msk.f32.mxu1 %vm1841_vm7, %v4737_v23  ;;  %v2675_v57 = vpop.permute.xlu0 %2674 }
 0x627   :  { %3874 = vmatprep.subr.msk.bf16.mxu0 %vm4889_vm15, %v3872_v20  ;;  %2905 = vmatprep.mubr.bf16.mxu0 %v4111_v25  ;;  %v2707_v1 = vpop.permute.xlu1 %2706  ;;  %v2727_v44 = vsel %vm137_vm0, %v4998_v59, %v2675_v57  ;;  %vm5207_vm0 = vcmp.lt.s32.totalorder %v758_v48, 512 }
 0x628   :  { %v2735_v56 = vsel %vm138_vm1, %v2734_v26, %v2707_v1 }
 0x62a   :  { %v2678_v12 = vpop.permute.xlu0 %2677 }
 0x62b   :  { %3837 = vmatpush3.xpose.msk.msra.mxu1 %vm1841_vm7, %v2756_v18  ;;  %v2710_v11 = vpop.permute.xlu1 %2709  ;;  %v2728_v16 = vsel %vm138_vm1, %v2727_v44, %v2678_v12 }
 0x62c   :  { %2926 = vmatprep.subr.bf16.mxu1 %v4899_v39  ;;  %v2736_v47 = vsel %vm1736_vm10, %v2735_v56, %v2710_v11 }
 0x62d   :  { %v2737_v63 = vsel %vm1738_vm11, %v2736_v47, %v5028_v38 }
 0x62e   :  { %3839 = vmatmul.mubr.msk.f32.vlgmr.msra.gmra.mrb[64].mxu1 %vm1841_vm7, %v4739_v24  ;;  %v2681_v33 = vpop.permute.xlu0 %2680 }
 0x62f   :  { %3841 = vmatprep.mubr.msk.f32.mxu1 %vm1841_vm7, %v4751_v30  ;;  %2927 = vmatpush1.bf16.msra.mxu1 %v4902_v40  ;;  %v2719_v39 = vpop.permute.xlu1 %2718  ;;  %v2729_v3 = vsel %vm1736_vm10, %v2728_v16, %v2681_v33 }
 0x630   :  { %v2738_v4 = vsel %vm1740_vm12, %v2737_v63, %v2719_v39  ;;  %v2730_v22 = vsel %vm1738_vm11, %v2729_v3, %v5023_v37 }
 0x632   :  { %3842 = vmatmul.mubr.msk.f32.gmra.mrb[66].mxu1 %vm1841_vm7, %v4753_v31  ;;  %v2690_v29 = vpop.permute.xlu0 %2689 }
 0x633   :  { %2958 = vmatprep.mubr.bf16.mxu1 %v4111_v25  ;;  %v2722_v35 = vpop.permute.xlu1 %2721  ;;  %v2731_v27 = vsel %vm1740_vm12, %v2730_v22, %v2690_v29 }
 0x634   :  { %v2739_v13 = vsel %vm1742_vm13, %v2738_v4, %v2722_v35 }
 0x636   :  { %v2693_v40 = vpop.permute.xlu0 %2692 }
 0x637   :  { %v2725_v14 = vpop.permute.xlu1 %2724  ;;  %v2732_v28 = vsel %vm1742_vm13, %v2731_v27, %v2693_v40 }
 0x638   :  { %v2740_v8 = vsel %vm1744_vm14, %v2739_v13, %v2725_v14 }
 0x639   :  { %v3006_v38 = vmul.f32 %v5075_v6, %v2740_v8 }
 0x63a   :  { %v2696_v46 = vpop.permute.xlu0 %2695 }
 0x63b   :  { %v2733_v52 = vsel %vm1744_vm14, %v2732_v28, %v2696_v46 }
 0x63c   :  { %v3005_v34 = vmul.f32 %v5075_v6, %v2733_v52 }
 0x63e   :  { %v3878_v37 = vpack.c.bf16 %v3006_v38, %v3005_v34  ;;  %v3008_v6 = vpop.permute.xlu0 %3007 }
 0x6f8   :  { %v5114_v55 = vpop.f32.mrb[60].mxu1  ;;  %v5116_v15 = vpop.f32.mrb[68].mxu0 }
 0x6f9   :  { %v5119_v21 = vpop.f32.mrb[61].mxu1  ;;  %v5121_v36 = vpop.f32.mrb[69].mxu0 }
 0x6fa   :  { %v2428_v61 = vpop.f32.mrb[62].mxu1  ;;  %v2469_v17 = vpop.f32.mrb[70].mxu0 }
 0x6fb   :  { %v2429_v59 = vpop.f32.mrb[63].mxu1  ;;  %v2470_v9 = vpop.f32.mrb[71].mxu0 }
 0x701   :  { %v3840_v45 = vpop.f32.mrb[64].mxu1 }
 0x702   :  { %2854 = vperm.xlu0 %3900, %v3840_v45   ;;  %v2826_v5 = vpop.f32.mrb[65].mxu1 }
 0x703   :  { %v2845_v58 = vpack.c.bf16 %v3840_v45, %v2826_v5  ;;  %2849 = vperm.xlu1 %3901, %v2826_v5  }
 0x705   :  { %v3843_v7 = vpop.f32.mrb[66].mxu1  ;;  %3650 = vmatmul.mubr.msk.bf16.vlgmr.msra.gmra.mrb[72].mxu0 %vm88_vm2, %v2845_v58  ;;  %3652 = vmatmul.mubr.msk.bf16.vlgmr.msra.gmra.mrb[68].mxu1 %vm88_vm2, %v2845_v58 }
 0x706   :  { %3877 = vmatpush3.bf16.xpose.msk.msra.mxu0 %vm4889_vm15, %v3872_v20  ;;  %v2836_v54 = vpop.f32.mrb[67].mxu1  ;;  %2915 = vmatprep.mubr.bf16.mxu0 %v4111_v25 }
 0x707   :  { %v2846_v10 = vpack.c.bf16 %v3843_v7, %v2836_v54  ;;  %3880 = vmatprep.subr.msk.bf16.mxu0 %vm4889_vm15, %v3878_v37  ;;  %2859 = vperm.xlu1 %3901, %v2836_v54  }
 0x708   :  { %2968 = vmatprep.mubr.bf16.mxu1 %v4111_v25  ;;  %3903 = vset.pattern.permute.xlu0 %v4118_v0 }
 0x70b   :  { %2864 = vperm.xlu1 %3901, %v3843_v7  }
 0x70d   :  { %3651 = vmatmul.mubr.msk.bf16.gmra.mrb[76].mxu0 %vm88_vm2, %v2846_v10  ;;  %3653 = vmatmul.mubr.msk.bf16.gmra.mrb[72].mxu1 %vm88_vm2, %v2846_v10 }
 0x70e   :  { %3883 = vmatpush3.bf16.xpose.msk.msra.mxu0 %vm4889_vm15, %v3878_v37  ;;  %3854 = vmatprep.mubr.msk.f32.mxu0 %vm1841_vm7, %v4737_v23 }
 0x70f   :  { %3852 = vmatprep.subr.msk.mxu0 %vm1841_vm7, %v3008_v6  ;;  %3902 = vset.pattern.permute.xlu1 %v4118_v0 }
 0x710   :  { %3176 = vmatprep.mubr.bf16.mxu1 %v4111_v25 }
 0x716   :  { %3853 = vmatpush3.xpose.msk.msra.mxu0 %vm1841_vm7, %v3008_v6 }
 0x719   :  { %3855 = vmatmul.mubr.msk.f32.vlgmr.msra.gmra.mrb[80].mxu0 %vm1841_vm7, %v4739_v24 }
 0x71a   :  { %3857 = vmatprep.mubr.msk.f32.mxu0 %vm1841_vm7, %v4751_v30 }
 0x71d   :  { %3858 = vmatmul.mubr.msk.f32.gmra.mrb[82].mxu0 %vm1841_vm7, %v4753_v31 }
 0x71e   :  { %3229 = vmatprep.mubr.bf16.mxu0 %v4111_v25 }
 0x781   :  { %v2855_v62 = vpop.permute.xlu0 %2854 }
 0x782   :  { %v2850_v23 = vpop.permute.xlu1 %2849 }
 0x786   :  { %v2860_v53 = vpop.permute.xlu1 %2859 }
 0x78a   :  { %v2865_v44 = vpop.permute.xlu1 %2864 }
 0x7d8   :  { %v2907_v41 = vpop.f32.mrb[72].mxu0  ;;  %v2960_v49 = vpop.f32.mrb[68].mxu1 }
 0x7d9   :  { %v2908_v32 = vadd.f32 %v2907_v41, %v2850_v23  ;;  %v2961_v42 = vadd.f32 %v2960_v49, %v2850_v23  ;;  %v2909_v19 = vpop.f32.mrb[73].mxu0  ;;  %v2962_v43 = vpop.f32.mrb[69].mxu1 }
 0x7da   :  { %v2910_v18 = vadd.f32 %v2909_v19, %v2850_v23  ;;  %v2963_v20 = vadd.f32 %v2962_v43, %v2850_v23  ;;  %v2911_v24 = vpop.f32.mrb[74].mxu0  ;;  %v2964_v2 = vpop.f32.mrb[70].mxu1 }
 0x7db   :  { %v2912_v57 = vadd.f32 %v2911_v24, %v2855_v62  ;;  %v2965_v30 = vadd.f32 %v2964_v2, %v2855_v62  ;;  %v2913_v1 = vpop.f32.mrb[75].mxu0  ;;  %v2966_v12 = vpop.f32.mrb[71].mxu1  ;;  %v2979_v33 = vmax.f32 %v2908_v32, 0.0  ;;  %v2981_v39 = vmax.f32 %v2961_v42, 0.0 }
 0x7dc   :  { %v2914_v31 = vadd.f32 %v2913_v1, %v2855_v62  ;;  %v2967_v11 = vadd.f32 %v2966_v12, %v2855_v62  ;;  %v2980_v26 = vmax.f32 %v2910_v18, 0.0  ;;  %v2982_v56 = vmax.f32 %v2963_v20, 0.0 }
 0x7dd   :  { %v2983_v29 = vmax.f32 %v2912_v57, 0.0  ;;  %v2985_v35 = vmax.f32 %v2965_v30, 0.0  ;;  %v3266_v2 = vpack.c.bf16 %v5000_v60, %v5000_v60  ;;  %v1654_v57 = vld [vmem:[#allocation2 + $0x4] sm:$0x1]  ;;  %v2575_v30 = vld [vmem:[#allocation2 + $0x5] sm:$0x1] }
 0x7de   :  { %v2984_v40 = vmax.f32 %v2914_v31, 0.0  ;;  %v2986_v14 = vmax.f32 %v2967_v11, 0.0  ;;  %v4119_v1 = vmov 269488144  }
 0x7df   :  { %v3110_v47 = vpack.c.bf16 %v2983_v29, %v2979_v33  ;;  %v3112_v16 = vpack.c.bf16 %v2985_v35, %v2981_v39  ;;  %v2478_v12 = vunpack.c.l.s4 %v4119_v1 }
 0x7e0   :  { %v3111_v3 = vpack.c.bf16 %v2984_v40, %v2980_v26  ;;  %v3113_v61 = vpack.c.bf16 %v2986_v14, %v2982_v56  ;;  %v2917_v17 = vpop.f32.mrb[76].mxu0  ;;  %v2970_v63 = vpop.f32.mrb[72].mxu1 }
 0x7e1   :  { %v2918_v59 = vadd.f32 %v2917_v17, %v2860_v53  ;;  %v2971_v9 = vadd.f32 %v2970_v63, %v2860_v53  ;;  %v2919_v4 = vpop.f32.mrb[77].mxu0  ;;  %v2972_v22 = vpop.f32.mrb[73].mxu1  ;;  %v2479_v11 = vunpack.c.0.s8 %v2478_v12 }
 0x7e2   :  { %v2920_v13 = vadd.f32 %v2919_v4, %v2860_v53  ;;  %v2973_v46 = vadd.f32 %v2972_v22, %v2860_v53  ;;  %v2921_v27 = vpop.f32.mrb[78].mxu0  ;;  %v2974_v8 = vpop.f32.mrb[74].mxu1  ;;  %3144 = vmatprep.subr.bf16.mxu1 %v3111_v3  ;;  %3197 = vmatprep.subr.bf16.mxu0 %v3113_v61 }
 0x7e3   :  { %v2922_v28 = vadd.f32 %v2921_v27, %v2865_v44  ;;  %v2975_v52 = vadd.f32 %v2974_v8, %v2865_v44  ;;  %v2923_v38 = vpop.f32.mrb[79].mxu0  ;;  %v2976_v45 = vpop.f32.mrb[75].mxu1  ;;  %3145 = vmatpush1.bf16.msra.mxu1 %v3110_v47  ;;  %3198 = vmatpush1.bf16.msra.mxu0 %v3112_v16  ;;  %v2987_v58 = vmax.f32 %v2918_v59, 0.0  ;;  %v2989_v37 = vmax.f32 %v2971_v9, 0.0 }
 0x7e4   :  { %v2924_v5 = vadd.f32 %v2923_v38, %v2865_v44  ;;  %v2977_v34 = vadd.f32 %v2976_v45, %v2865_v44  ;;  %v2988_v10 = vmax.f32 %v2920_v13, 0.0  ;;  %v2990_v6 = vmax.f32 %v2973_v46, 0.0 }
 0x7e5   :  { %v2991_v7 = vmax.f32 %v2922_v28, 0.0  ;;  %v2993_v54 = vmax.f32 %v2975_v52, 0.0  ;;  %v5185_v29 = vsub.s32 %v2479_v11, %v4705_v50 }
 0x7e6   :  { %v2992_v23 = vmax.f32 %v2924_v5, 0.0  ;;  %v2994_v62 = vmax.f32 %v2977_v34, 0.0  ;;  %v4120_v5 = vmov 1966171168  }
 0x7e7   :  { %v3114_v53 = vpack.c.bf16 %v2991_v7, %v2987_v58  ;;  %v3116_v41 = vpack.c.bf16 %v2993_v54, %v2989_v37  ;;  %v2546_v34 = vunpack.c.l.s4 %v4120_v5 }
 0x7e8   :  { %v3115_v49 = vpack.c.bf16 %v2992_v23, %v2988_v10  ;;  %v3117_v32 = vpack.c.bf16 %v2994_v62, %v2990_v6 }
 0x7e9   :  { %v2547_v58 = vunpack.c.0.s8 %v2546_v34 }
 0x7ea   :  { %3146 = vmatprep.subr.bf16.mxu1 %v3115_v49  ;;  %3199 = vmatprep.subr.bf16.mxu0 %v3117_v32 }
 0x7eb   :  { %3147 = vmatpush1.bf16.msra.mxu1 %v3114_v53  ;;  %3200 = vmatpush1.bf16.msra.mxu0 %v3116_v41  ;;  %v5202_v7 = vsub.s32 %v2547_v58, %v4705_v50 }
 0x7ec   :  { %v3856_v42 = vpop.f32.mrb[80].mxu0 }
 0x7ed   :  { %3125 = vperm.xlu1 %3902, %v3856_v42   ;;  %v3089_v19 = vpop.f32.mrb[81].mxu0 }
 0x7ee   :  { %v3108_v43 = vpack.c.bf16 %v3856_v42, %v3089_v19  ;;  %3120 = vperm.xlu0 %3903, %v3089_v19  }
 0x7f0   :  { %v3859_v18 = vpop.f32.mrb[82].mxu0  ;;  %3663 = vmatmul.mubr.msk.bf16.vlgmr.msra.gmra.mrb[76].mxu1 %vm1841_vm7, %v3108_v43  ;;  %3665 = vmatmul.mubr.msk.bf16.vlgmr.msra.gmra.mrb[84].mxu0 %vm1841_vm7, %v3108_v43 }
 0x7f1   :  { %v3099_v20 = vpop.f32.mrb[83].mxu0  ;;  %3186 = vmatprep.mubr.bf16.mxu1 %v4111_v25  ;;  %3239 = vmatprep.mubr.bf16.mxu0 %v4111_v25 }
 0x7f2   :  { %v3109_v24 = vpack.c.bf16 %v3859_v18, %v3099_v20  ;;  %3135 = vperm.xlu0 %3903, %v3859_v18   ;;  %3130 = vperm.xlu1 %3902, %v3099_v20  }
 0x7f6   :  { %3904 = vset.pattern.permute.xlu0 %v4111_v25  ;;  %3276 = vrot.lane.b32.xlu1 %v3266_v2, %s4114_s24 }
 0x7f7   :  { %2474 = vperm.xlu0 %3904, %v1654_v57   ;;  %3905 = vset.pattern.permute.xlu1 %v4111_v25 }
 0x7f8   :  { %3664 = vmatmul.mubr.msk.bf16.gmra.mrb[80].mxu1 %vm1841_vm7, %v3109_v24  ;;  %3666 = vmatmul.mubr.msk.bf16.gmra.mrb[88].mxu0 %vm1841_vm7, %v3109_v24 }
 0x7f9   :  { %3313 = vmatprep.mubr.bf16.mxu1 %v4111_v25 }
 0x7fa   :  { %3365 = vperm.xlu1 %3905, %v2575_v30  }
 0x7fb   :  { %3907 = vset.pattern.permute.xlu0 %v4118_v0 }
 0x7fc   :  { %3386 = vperm.xlu0 %3907, %v2575_v30  }
 0x7fe   :  { %3906 = vset.pattern.permute.xlu1 %v4118_v0 }
 0x7ff   :  { %2495 = vperm.xlu1 %3906, %v1654_v57  }
 0x86c   :  { %v5176_v60 = vpop.permute.xlu1 %3125 }
 0x86d   :  { %v5178_v31 = vpop.permute.xlu0 %3120 }
 0x871   :  { %v5180_v33 = vpop.permute.xlu1 %3130  ;;  %v5182_v39 = vpop.permute.xlu0 %3135 }
 0x875   :  { %v5187_v35 = vpop.permute.xlu1 %3276 }
 0x876   :  { %v2475_v26 = vpop.permute.xlu0 %2474 }
 0x877   :  { %v2483_v0 = vrot.slane %v2475_v26, %v5185_v29 }
 0x879   :  { %v5190_v56 = vpop.permute.xlu1 %3365  ;;  %v2488_v14 = vrot.slane %v2483_v0, %v4708_v51 }
 0x87a   :  { %v3374_v40 = vrot.slane %v5190_v56, %v5185_v29 }
 0x87b   :  { %v2490_v16 = vmul.f32 %v2488_v14, %v5114_v55  ;;  %v2491_v3 = vmul.f32 %v2488_v14, %v5119_v21  ;;  %v2492_v61 = vmul.f32 %v2488_v14, %v5116_v15  ;;  %v2493_v17 = vmul.f32 %v2488_v14, %v5121_v36 }
 0x87e   :  { %v2496_v44 = vpop.permute.xlu1 %2495 }
 0x87f   :  { %v2504_v47 = vrot.slane %v2496_v44, %v5185_v29 }
 0x881   :  { %v2509_v63 = vrot.slane %v2504_v47, %v4708_v51 }
 0x883   :  { %v2511_v59 = vadd.f32 %v2509_v63, %v2490_v16  ;;  %v2512_v9 = vadd.f32 %v2509_v63, %v2491_v3  ;;  %v2513_v4 = vadd.f32 %v2509_v63, %v2492_v61  ;;  %v2514_v22 = vadd.f32 %v2509_v63, %v2493_v17 }
 0x885   :  { %v3637_v13 = vmul.f32 -1.442695, %v2511_v59  ;;  %v3638_v46 = vmul.f32 -1.442695, %v2512_v9  ;;  %v3639_v27 = vmul.f32 -1.442695, %v2513_v4 }
 0x886   :  { %v3640_v8 = vmul.f32 -1.442695, %v2514_v22 }
 0x887   :  { %4054 = vpow2.f32 %v3637_v13 }
 0x888   :  { %4056 = vpow2.f32 %v3638_v46 }
 0x889   :  { %4058 = vpow2.f32 %v3639_v27 }
 0x88a   :  { %4060 = vpow2.f32 %v3640_v8 }
 0x891   :  { %v4055_v55 = vpop.eup %4054 }
 0x892   :  { %v4057_v21 = vpop.eup %4056  ;;  %v2527_v28 = vadd.f32 1.0, %v4055_v55 }
 0x893   :  { %v4059_v15 = vpop.eup %4058  ;;  %v2528_v52 = vadd.f32 1.0, %v4057_v21 }
 0x894   :  { %v4061_v36 = vpop.eup %4060  ;;  %v2529_v38 = vadd.f32 1.0, %v4059_v15  ;;  %4062 = vrcp.f32 %v2527_v28 }
 0x895   :  { %v2530_v45 = vadd.f32 1.0, %v4061_v36  ;;  %4064 = vrcp.f32 %v2528_v52 }
 0x896   :  { %4066 = vrcp.f32 %v2529_v38 }
 0x897   :  { %4068 = vrcp.f32 %v2530_v45 }
 0x89e   :  { %v4063_v37 = vpop.eup %4062 }
 0x89f   :  { %v4065_v54 = vpop.eup %4064 }
 0x8a0   :  { %v4067_v10 = vpop.eup %4066  ;;  %v2543_v6 = vcombine.low %v4063_v37, %v4065_v54 }
 0x8a1   :  { %v4069_v23 = vpop.eup %4068 }
 0x8a2   :  { %v2544_v62 = vcombine.low %v4067_v10, %v4069_v23  ;;  %v2551_v53 = vrot.slane %v2543_v6, %v5202_v7 }
 0x8a4   :  { %v2558_v41 = vrot.slane %v2544_v62, %v5202_v7 }
 0x8a6   :  { %v2559_v49 = vcombine.low %v2551_v53, %v2558_v41 }
 0x8a8   :  { %v2566_v42 = vrot.slane %v2559_v49, %v5202_v7 }
 0x8aa   :  { %2572 = vst.msk [vmem:[#allocation3] ss:$2 sm:$0xf] %vm5207_vm0, %v2566_v42 }
 0x8c3   :  { %v3178_v50 = vpop.f32.mrb[76].mxu1  ;;  %v3231_v19 = vpop.f32.mrb[84].mxu0 }
 0x8c4   :  { %v3179_v43 = vadd.f32 %v3178_v50, %v5178_v31  ;;  %v3232_v18 = vadd.f32 %v3231_v19, %v5178_v31  ;;  %v3180_v20 = vpop.f32.mrb[77].mxu1  ;;  %v3233_v24 = vpop.f32.mrb[85].mxu0 }
 0x8c5   :  { %v3181_v2 = vadd.f32 %v3180_v20, %v5178_v31  ;;  %v3234_v48 = vadd.f32 %v3233_v24, %v5178_v31  ;;  %v3182_v57 = vpop.f32.mrb[78].mxu1  ;;  %v3235_v30 = vpop.f32.mrb[86].mxu0 }
 0x8c6   :  { %v3183_v1 = vadd.f32 %v3182_v57, %v5176_v60  ;;  %v3236_v12 = vadd.f32 %v3235_v30, %v5176_v60  ;;  %v3184_v11 = vpop.f32.mrb[79].mxu1  ;;  %v3237_v26 = vpop.f32.mrb[87].mxu0  ;;  %v3250_v44 = vmax.f32 %v3179_v43, 0.0  ;;  %v3252_v47 = vmax.f32 %v3232_v18, 0.0 }
 0x8c7   :  { %v3185_v0 = vadd.f32 %v3184_v11, %v5176_v60  ;;  %v3238_v14 = vadd.f32 %v3237_v26, %v5176_v60  ;;  %v3251_v61 = vmax.f32 %v3181_v2, 0.0  ;;  %v3253_v17 = vmax.f32 %v3234_v48, 0.0 }
 0x8c8   :  { %v3254_v16 = vmax.f32 %v3183_v1, 0.0  ;;  %v3256_v3 = vmax.f32 %v3236_v12, 0.0  ;;  %v3379_v43 = vrot.slane %v3374_v40, %v4708_v51 }
 0x8c9   :  { %v3255_v63 = vmax.f32 %v3185_v0, 0.0  ;;  %v3257_v31 = vmax.f32 %v3238_v14, 0.0 }
 0x8ca   :  { %v3267_v59 = vpack.c.bf16 %v3254_v16, %v3250_v44  ;;  %v3269_v9 = vpack.c.bf16 %v3256_v3, %v3252_v47 }
 0x8cb   :  { %v3268_v4 = vpack.c.bf16 %v3255_v63, %v3251_v61  ;;  %v3270_v22 = vpack.c.bf16 %v3257_v31, %v3253_v17  ;;  %v3188_v13 = vpop.f32.mrb[80].mxu1  ;;  %v3241_v46 = vpop.f32.mrb[88].mxu0 }
 0x8cc   :  { %v3189_v27 = vadd.f32 %v3188_v13, %v5180_v33  ;;  %v3242_v8 = vadd.f32 %v3241_v46, %v5180_v33  ;;  %v3190_v55 = vpop.f32.mrb[81].mxu1  ;;  %v3243_v60 = vpop.f32.mrb[89].mxu0 }
 0x8cd   :  { %v3191_v21 = vadd.f32 %v3190_v55, %v5180_v33  ;;  %v3244_v28 = vadd.f32 %v3243_v60, %v5180_v33  ;;  %v3192_v15 = vpop.f32.mrb[82].mxu1  ;;  %v3245_v52 = vpop.f32.mrb[90].mxu0  ;;  %3281 = vmatprep.subr.bf16.mxu1 %v3268_v4 }
 0x8ce   :  { %v3193_v36 = vadd.f32 %v3192_v15, %v5182_v39  ;;  %v3246_v38 = vadd.f32 %v3245_v52, %v5182_v39  ;;  %v3194_v45 = vpop.f32.mrb[83].mxu1  ;;  %v3247_v5 = vpop.f32.mrb[91].mxu0  ;;  %3282 = vmatpush1.bf16.msra.mxu1 %v3267_v59  ;;  %v3258_v37 = vmax.f32 %v3189_v27, 0.0  ;;  %v3260_v54 = vmax.f32 %v3242_v8, 0.0 }
 0x8cf   :  { %v3195_v34 = vadd.f32 %v3194_v45, %v5182_v39  ;;  %v3248_v58 = vadd.f32 %v3247_v5, %v5182_v39  ;;  %v3259_v23 = vmax.f32 %v3191_v21, 0.0  ;;  %v3261_v33 = vmax.f32 %v3244_v28, 0.0  ;;  %v3387_v39 = vpop.permute.xlu0 %3386 }
 0x8d0   :  { %v3262_v10 = vmax.f32 %v3193_v36, 0.0  ;;  %v3264_v6 = vmax.f32 %v3246_v38, 0.0  ;;  %v3395_v19 = vrot.slane %v3387_v39, %v5185_v29 }
 0x8d1   :  { %v3263_v62 = vmax.f32 %v3195_v34, 0.0  ;;  %v3265_v53 = vmax.f32 %v3248_v58, 0.0 }
 0x8d2   :  { %v3271_v41 = vpack.c.bf16 %v3262_v10, %v3258_v37  ;;  %v3273_v49 = vpack.c.bf16 %v3264_v6, %v3260_v54  ;;  %v3400_v20 = vrot.slane %v3395_v19, %v4708_v51 }
 0x8d3   :  { %v3272_v42 = vpack.c.bf16 %v3263_v62, %v3259_v23  ;;  %v3274_v50 = vpack.c.bf16 %v3265_v53, %v3261_v33 }
 0x8d5   :  { %3283 = vmatprep.subr.bf16.mxu1 %v3272_v42 }
 0x8d6   :  { %3284 = vmatpush1.bf16.msra.mxu1 %v3271_v41 }
 0x8d7   :  { %3322 = vmatprep.subr.bf16.mxu1 %v3270_v22 }
 0x8d9   :  { %3667 = vmatmul.mubr.msk.bf16.vlgmr.msra.gmra.mrb[84].mxu1 %vm1841_vm7, %v5187_v35 }
 0x8da   :  { %3323 = vmatpush1.bf16.msra.mxu1 %v3269_v9  ;;  %3354 = vmatprep.mubr.bf16.mxu1 %v4111_v25 }
 0x8db   :  { %3324 = vmatprep.subr.bf16.mxu1 %v3274_v50 }
 0x8de   :  { %3325 = vmatpush1.bf16.msra.mxu1 %v3273_v49 }
 0x8e1   :  { %3668 = vmatmul.mubr.msk.bf16.vlgmr.msra.gmra.mrb[88].mxu1 %vm1841_vm7, %v5187_v35 }
 0x9ac   :  { %v3315_v18 = vpop.f32.mrb[84].mxu1 }
 0x9ad   :  { %v3381_v24 = vmul.f32 %v3379_v43, %v3315_v18  ;;  %v3317_v2 = vpop.f32.mrb[85].mxu1 }
 0x9ae   :  { %v3382_v48 = vmul.f32 %v3379_v43, %v3317_v2  ;;  %v3319_v25 = vpop.f32.mrb[86].mxu1 }
 0x9af   :  { %v3402_v57 = vadd.f32 %v3400_v20, %v3381_v24  ;;  %v3320_v30 = vpop.f32.mrb[87].mxu1 }
 0x9b0   :  { %v3403_v1 = vadd.f32 %v3400_v20, %v3382_v48 }
 0x9b1   :  { %v3669_v12 = vmul.f32 -1.442695, %v3402_v57 }
 0x9b2   :  { %v3670_v35 = vmul.f32 -1.442695, %v3403_v1 }
 0x9b3   :  { %4070 = vpow2.f32 %v3669_v12 }
 0x9b4   :  { %4072 = vpow2.f32 %v3670_v35  ;;  %v3356_v11 = vpop.f32.mrb[88].mxu1 }
 0x9b5   :  { %v3383_v26 = vmul.f32 %v3379_v43, %v3356_v11  ;;  %v3358_v0 = vpop.f32.mrb[89].mxu1 }
 0x9b6   :  { %v3384_v14 = vmul.f32 %v3379_v43, %v3358_v0  ;;  %v3360_v29 = vpop.f32.mrb[90].mxu1 }
 0x9b7   :  { %v3404_v56 = vadd.f32 %v3400_v20, %v3383_v26  ;;  %v3361_v40 = vpop.f32.mrb[91].mxu1 }
 0x9b8   :  { %v3405_v44 = vadd.f32 %v3400_v20, %v3384_v14 }
 0x9b9   :  { %v3671_v51 = vmul.f32 -1.442695, %v3404_v56 }
 0x9ba   :  { %v3672_v47 = vmul.f32 -1.442695, %v3405_v44 }
 0x9bb   :  { %4074 = vpow2.f32 %v3671_v51 }
 0x9bc   :  { %4076 = vpow2.f32 %v3672_v47 }
 0x9bd   :  { %v4071_v16 = vpop.eup %4070 }
 0x9be   :  { %v4073_v3 = vpop.eup %4072  ;;  %v3418_v61 = vadd.f32 1.0, %v4071_v16 }
 0x9bf   :  { %v3419_v17 = vadd.f32 1.0, %v4073_v3 }
 0x9c0   :  { %4078 = vrcp.f32 %v3418_v61 }
 0x9c1   :  { %4080 = vrcp.f32 %v3419_v17 }
 0x9c5   :  { %v4075_v63 = vpop.eup %4074 }
 0x9c6   :  { %v4077_v31 = vpop.eup %4076  ;;  %v3420_v59 = vadd.f32 1.0, %v4075_v63 }
 0x9c7   :  { %v3421_v9 = vadd.f32 1.0, %v4077_v31 }
 0x9c8   :  { %4082 = vrcp.f32 %v3420_v59 }
 0x9c9   :  { %4084 = vrcp.f32 %v3421_v9 }
 0x9ca   :  { %v4079_v4 = vpop.eup %4078 }
 0x9cb   :  { %v4081_v22 = vpop.eup %4080 }
 0x9cc   :  { %v3434_v13 = vcombine.low %v4079_v4, %v4081_v22 }
 0x9ce   :  { %v3442_v55 = vrot.slane %v3434_v13, %v5202_v7 }
 0x9d2   :  { %v4083_v46 = vpop.eup %4082 }
 0x9d3   :  { %v4085_v27 = vpop.eup %4084 }
 0x9d4   :  { %v3435_v8 = vcombine.low %v4083_v46, %v4085_v27 }
 0x9d6   :  { %v3449_v60 = vrot.slane %v3435_v8, %v5202_v7 }
 0x9d8   :  { %v3450_v21 = vcombine.low %v3442_v55, %v3449_v60 }
 0x9da   :  { %v3457_v28 = vrot.slane %v3450_v21, %v5202_v7 }
 0x9dc   :  { %3460 = vst.msk [vmem:[#allocation3 + $0x1] ss:$2 sm:$0xf] %vm5207_vm0, %v3457_v28 }
 0x9dd   :  { %4097 = shalt.err (!%p4094_p4)
}
 0x9de   :  { %s4098_s12 = scalar_lea.hbm %s5266_s8, 128 }
 0x9df   :  { %p4099_p5 = scmp.ne.s32.totalorder %s5266_s8, %s4098_s12  ;;  %p4102_p6 = scmp.lt.u32.totalorder %s4098_s12, %s5266_s8 }
 0x9e1   :  { %p4104_p7 = pnand %p4102_p6, %p4099_p5 }
 0x9e3   :  { %4107 = shalt.err (!%p4104_p7)
}
 0x9e4   :  { %3470 = dma.vmem_to_hbm [thread:$0]  %s3468_s10, 128, %s5266_s8, [#allocation4]  }
 0x9e5   :  { %4108 = dma.done.wait [#allocation4], 128  }
 0x9e6   :  { %4109 = vsyncadd [#allocation4], 4294967168 }
 0x9e7   :  { %3474 = vsyncpa [#allocation4], 1 }

</bundles_post_ra>
